<compile_context>
chip_gen: v7x
topology: tpu7x:2x2x1
jax: 0.10.0
libtpu: 0.0.40
codegen_flags: <defaults>
</compile_context>

<pallas_src>
import functools

import jax
import jax.numpy as jnp
from jax.experimental import pallas as pl
from jax.experimental.pallas import tpu as pltpu


_HIGHEST = jax.lax.Precision.HIGHEST
_VMEM = pl.BlockSpec(memory_space=pltpu.MemorySpace.VMEM)
_SMEM = pl.BlockSpec(memory_space=pltpu.MemorySpace.SMEM)


# ----------------------------- Fused Pallas kernel ------------------------- #

def _make_decoder_kernel(num_layers, hidden_size, batch):
    """Fused (embed -> L x LSTM cell -> fc) kernel body; grid axis 0 = timestep."""
    L, H, N = num_layers, hidden_size, batch

    def kernel(*refs):
        # inputs : tok(SMEM), emb, (w_ih, w_hh, b) * L, fc_w, fc_b, hidden, cell
        # outputs: preds (1, N, O_pad block per step), new_hidden, new_cell
        # scratch: h_state, c_state  (carried across grid steps)
        tok_ref, emb_ref = refs[0], refs[1]
        layer_refs = refs[2:2 + 3 * L]
        fcw_ref, fcb_ref, h_in_ref, c_in_ref = refs[2 + 3 * L:6 + 3 * L]
        preds_ref, h_out_ref, c_out_ref = refs[6 + 3 * L:9 + 3 * L]
        h_st, c_st = refs[9 + 3 * L:]

        t = pl.program_id(0)

        @pl.when(t == 0)
        def _():
            h_st[...] = h_in_ref[...]
            c_st[...] = c_in_ref[...]

        # Exact embedding row gather: token ids read as SMEM scalars, each row
        # fetched with a dynamic leading-axis index into the VMEM (V, 1, E) table.
        rows = [emb_ref[tok_ref[t, n]] for n in range(N)]        # N x (1, E)
        x = jnp.concatenate(rows, axis=0)                        # (N, E)

        for l in range(L):
            w_ih_ref = layer_refs[3 * l]       # (in_dim, 4H)
            w_hh_ref = layer_refs[3 * l + 1]   # (H, 4H)
            b_ref = layer_refs[3 * l + 2]      # (1, 4H)  == b_ih + b_hh
            h_prev = h_st[l]                   # (N, H)
            c_prev = c_st[l]                   # (N, H)

            # Two small dots; no lane-axis concat of [x, h].
            gates = (jnp.dot(x, w_ih_ref[...],
                             preferred_element_type=jnp.float32,
                             precision=_HIGHEST)
                     + jnp.dot(h_prev, w_hh_ref[...],
                               preferred_element_type=jnp.float32,
                               precision=_HIGHEST)
                     + b_ref[...])                               # (N, 4H)

            # Gate order is (i, f, o, g): one sigmoid covers exactly i/f/o.
            sg = jax.nn.sigmoid(gates[:, 0:3 * H])
            i = sg[:, 0:H]
            f = sg[:, H:2 * H]
            o = sg[:, 2 * H:3 * H]
            g = jnp.tanh(gates[:, 3 * H:4 * H])

            c_new = f * c_prev + i * g
            h_new = o * jnp.tanh(c_new)

            h_st[l] = h_new
            c_st[l] = c_new
            x = h_new                           # next layer's input, stays in vregs

        # fc projection; lane-dense (padded to a multiple of 128) output row.
        preds_ref[0] = (jnp.dot(x, fcw_ref[...],
                                preferred_element_type=jnp.float32,
                                precision=_HIGHEST)
                        + fcb_ref[...])

        @pl.when(t == pl.num_programs(0) - 1)
        def _():
            h_out_ref[...] = h_st[...]
            c_out_ref[...] = c_st[...]

    return kernel


# ------------------------------ Wrappers ----------------------------------- #

def _decode_steps(packed, tokens, hidden, cell):
    """Runs T teacher-forced decode steps in ONE pallas_call."""
    T, N = tokens.shape
    L, _, H = hidden.shape
    o_pad = packed["fc_w"].shape[1]

    inputs = [tokens, packed["embedding"]]
    for (w_ih, w_hh, b) in packed["lstm"]:
        inputs += [w_ih, w_hh, b]
    inputs += [packed["fc_w"], packed["fc_b"], hidden, cell]

    n_in = len(inputs)
    idx_hidden, idx_cell = n_in - 2, n_in - 1

    in_specs = [_SMEM] + [_VMEM] * (n_in - 1)

    preds, new_h, new_c = pl.pallas_call(
        _make_decoder_kernel(L, H, N),
        grid=(T,),
        out_shape=(jax.ShapeDtypeStruct((T, N, o_pad), jnp.float32),
                   jax.ShapeDtypeStruct((L, N, H), jnp.float32),
                   jax.ShapeDtypeStruct((L, N, H), jnp.float32)),
        in_specs=in_specs,
        out_specs=(pl.BlockSpec((1, N, o_pad), lambda t: (t, 0, 0)),
                   _VMEM, _VMEM),
        scratch_shapes=[pltpu.VMEM((L, N, H), jnp.float32),
                        pltpu.VMEM((L, N, H), jnp.float32)],
        input_output_aliases={idx_hidden: 1, idx_cell: 2},
        compiler_params=pltpu.CompilerParams(
            dimension_semantics=("arbitrary",)),
    )(*inputs)
    return preds, new_h, new_c


@functools.partial(jax.jit, static_argnames=("output_size",))
def decoder_forward(packed, x_tokens, hidden, cell, *, output_size):
    """Mirrors Decoder.forward: unsqueeze -> embed -> dropout -> LSTM -> fc.squeeze."""
    N = x_tokens.shape[0]
    tokens = x_tokens.astype(jnp.int32).reshape(1, N)
    preds, new_h, new_c = _decode_steps(packed, tokens, hidden, cell)
    return preds[0, :, :output_size], new_h, new_c


@functools.partial(jax.jit, static_argnames=("output_size",))
def decoder_decode(packed, tokens, hidden, cell, *, output_size):
    """T teacher-forced Decoder.forward steps fused in one kernel launch."""
    preds, new_h, new_c = _decode_steps(
        packed, tokens.astype(jnp.int32), hidden, cell)
    return preds[..., :output_size], new_h, new_c


# --------------------------- Param repacking -------------------------------- #

def _reorder_gates(a, H):
    """Reorder PyTorch gate columns (i, f, g, o) -> kernel order (i, f, o, g)."""
    return jnp.concatenate(
        [a[..., 0:H], a[..., H:2 * H], a[..., 3 * H:4 * H], a[..., 2 * H:3 * H]],
        axis=-1)


def prepare_params(params):
    """One-time repack of PyTorch-layout params into the fused-kernel layout."""
    H = params["lstm"][0][1].shape[0]          # w_hh: (H, 4H)
    out_size = params["fc_w"].shape[1]
    o_pad = ((out_size + 127) // 128) * 128    # lane-dense fc output
    V, E = params["embedding"].shape
    return {
        "embedding": params["embedding"].reshape(V, 1, E),
        "lstm": [(_reorder_gates(w_ih, H),
                  _reorder_gates(w_hh, H),
                  _reorder_gates(b, H))
                 for (w_ih, w_hh, b) in params["lstm"]],
        "fc_w": jnp.pad(params["fc_w"], ((0, 0), (0, o_pad - out_size))),
        "fc_b": jnp.pad(params["fc_b"], ((0, 0), (0, o_pad - out_size))),
    }


# --------------------------- Deterministic init ----------------------------- #

def init_params(key, input_size, embedding_size, hidden_size, output_size, num_layers):
    n_keys = 1 + 4 * num_layers + 2
    keys = iter(jax.random.split(key, n_keys))
    scale = 0.1

    params = {
        "embedding": scale * jax.random.normal(
            next(keys), (input_size, embedding_size), jnp.float32),
        "lstm": [],
    }
    for l in range(num_layers):
        in_dim = embedding_size if l == 0 else hidden_size
        w_ih = scale * jax.random.normal(next(keys), (in_dim, 4 * hidden_size), jnp.float32)
        w_hh = scale * jax.random.normal(next(keys), (hidden_size, 4 * hidden_size), jnp.float32)
        # PyTorch keeps separate b_ih, b_hh; the cell only ever uses their sum.
        b_ih = scale * jax.random.normal(next(keys), (1, 4 * hidden_size), jnp.float32)
        b_hh = scale * jax.random.normal(next(keys), (1, 4 * hidden_size), jnp.float32)
        params["lstm"].append((w_ih, w_hh, b_ih + b_hh))

    params["fc_w"] = scale * jax.random.normal(
        next(keys), (hidden_size, output_size), jnp.float32)
    params["fc_b"] = scale * jax.random.normal(
        next(keys), (1, output_size), jnp.float32)
    return params


# ------------------------- Plain-JAX reference ------------------------------ #

def decoder_reference(params, x_tokens, hidden, cell):
    """PyTorch-equivalent math in plain JAX (gate order i, f, g, o)."""
    H = hidden.shape[-1]
    x = params["embedding"][x_tokens]
    new_h, new_c = [], []
    for l, (w_ih, w_hh, b) in enumerate(params["lstm"]):
        gates = (jnp.dot(x, w_ih, precision=_HIGHEST)
                 + jnp.dot(hidden[l], w_hh, precision=_HIGHEST) + b)
        i = jax.nn.sigmoid(gates[:, 0:H])
        f = jax.nn.sigmoid(gates[:, H:2 * H])
        g = jnp.tanh(gates[:, 2 * H:3 * H])
        o = jax.nn.sigmoid(gates[:, 3 * H:4 * H])
        c_new = f * cell[l] + i * g
        h_new = o * jnp.tanh(c_new)
        new_h.append(h_new)
        new_c.append(c_new)
        x = h_new
    preds = jnp.dot(x, params["fc_w"], precision=_HIGHEST) + params["fc_b"]
    return preds, jnp.stack(new_h), jnp.stack(new_c)


# --------------------------------- Main ------------------------------------ #

if __name__ == "__main__":
    input_size = 50       # vocab size (Embedding rows)
    embedding_size = 16
    hidden_size = 32
    output_size = 50
    num_layers = 2
    batch = 8
    T = 4                 # decode steps for the fused multi-step check

    root = jax.random.PRNGKey(0)
    k_params, k_tok, k_seq, k_h, k_c = jax.random.split(root, 5)

    params = init_params(k_params, input_size, embedding_size,
                         hidden_size, output_size, num_layers)
    packed = prepare_params(params)

    x_tokens = jax.random.randint(k_tok, (batch,), 0, input_size, dtype=jnp.int32)
    hidden = 0.1 * jax.random.normal(k_h, (num_layers, batch, hidden_size), jnp.float32)
    cell = 0.1 * jax.random.normal(k_c, (num_layers, batch, hidden_size), jnp.float32)

    # ---- Single step: exactly Decoder.forward -----------------------------
    preds, new_hidden, new_cell = decoder_forward(
        packed, x_tokens, hidden, cell, output_size=output_size)
    jax.block_until_ready((preds, new_hidden, new_cell))

    assert preds.shape == (batch, output_size)
    assert new_hidden.shape == (num_layers, batch, hidden_size)
    assert new_cell.shape == (num_layers, batch, hidden_size)

    ref_preds, ref_h, ref_c = decoder_reference(params, x_tokens, hidden, cell)
    assert jnp.allclose(preds, ref_preds, atol=2e-3, rtol=2e-3), "preds mismatch"
    assert jnp.allclose(new_hidden, ref_h, atol=2e-3, rtol=2e-3), "hidden mismatch"
    assert jnp.allclose(new_cell, ref_c, atol=2e-3, rtol=2e-3), "cell mismatch"

    # ---- Multi-step: T decode steps fused in ONE pallas_call ---------------
    tokens_seq = jax.random.randint(k_seq, (T, batch), 0, input_size, dtype=jnp.int32)
    m_preds, m_h, m_c = decoder_decode(
        packed, tokens_seq, hidden, cell, output_size=output_size)
    jax.block_until_ready((m_preds, m_h, m_c))

    assert m_preds.shape == (T, batch, output_size)

    rh, rc = hidden, cell
    ref_steps = []
    for t in range(T):
        p_t, rh, rc = decoder_reference(params, tokens_seq[t], rh, rc)
        ref_steps.append(p_t)
    ref_seq = jnp.stack(ref_steps)
    assert jnp.allclose(m_preds, ref_seq, atol=2e-3, rtol=2e-3), "multi-step preds mismatch"
    assert jnp.allclose(m_h, rh, atol=2e-3, rtol=2e-3), "multi-step hidden mismatch"
    assert jnp.allclose(m_c, rc, atol=2e-3, rtol=2e-3), "multi-step cell mismatch"

    print("KERNEL_OK")
</pallas_src>

<mosaic_0001>
module attributes {stable_mosaic.version = 11 : i64} {
  func.func @kernel(%arg0: i32, %arg1: memref<1x8xi32, #tpu.memory_space<smem>>, %arg2: memref<50x1x16xf32, #tpu.memory_space<vmem>>, %arg3: memref<16x128xf32, #tpu.memory_space<vmem>>, %arg4: memref<32x128xf32, #tpu.memory_space<vmem>>, %arg5: memref<1x128xf32, #tpu.memory_space<vmem>>, %arg6: memref<32x128xf32, #tpu.memory_space<vmem>>, %arg7: memref<32x128xf32, #tpu.memory_space<vmem>>, %arg8: memref<1x128xf32, #tpu.memory_space<vmem>>, %arg9: memref<32x128xf32, #tpu.memory_space<vmem>>, %arg10: memref<1x128xf32, #tpu.memory_space<vmem>>, %arg11: memref<2x8x32xf32, #tpu.memory_space<vmem>>, %arg12: memref<2x8x32xf32, #tpu.memory_space<vmem>>, %arg13: memref<1x8x128xf32, #tpu.memory_space<vmem>>, %arg14: memref<2x8x32xf32, #tpu.memory_space<vmem>>, %arg15: memref<2x8x32xf32, #tpu.memory_space<vmem>>, %arg16: memref<2x8x32xf32, #tpu.memory_space<vmem>>, %arg17: memref<2x8x32xf32, #tpu.memory_space<vmem>>) attributes {dimension_semantics = [#tpu.dimension_semantics<arbitrary>], iteration_bounds = array<i64: 1>, scalar_prefetch = 0 : i64, scratch_operands = 2 : i64, tpu.core_type = #tpu.core_type<tc>, window_params = [{transform_indices = @transform_0, window_bounds = array<i64: 1, 8>}, {pipeline_mode = #tpu.pipeline_mode<synchronous>, transform_indices = @transform_1, window_bounds = array<i64: 50, 1, 16>}, {pipeline_mode = #tpu.pipeline_mode<synchronous>, transform_indices = @transform_2, window_bounds = array<i64: 16, 128>}, {pipeline_mode = #tpu.pipeline_mode<synchronous>, transform_indices = @transform_3, window_bounds = array<i64: 32, 128>}, {pipeline_mode = #tpu.pipeline_mode<synchronous>, transform_indices = @transform_4, window_bounds = array<i64: 1, 128>}, {pipeline_mode = #tpu.pipeline_mode<synchronous>, transform_indices = @transform_5, window_bounds = array<i64: 32, 128>}, {pipeline_mode = #tpu.pipeline_mode<synchronous>, transform_indices = @transform_6, window_bounds = array<i64: 32, 128>}, {pipeline_mode = #tpu.pipeline_mode<synchronous>, transform_indices = @transform_7, window_bounds = array<i64: 1, 128>}, {pipeline_mode = #tpu.pipeline_mode<synchronous>, transform_indices = @transform_8, window_bounds = array<i64: 32, 128>}, {pipeline_mode = #tpu.pipeline_mode<synchronous>, transform_indices = @transform_9, window_bounds = array<i64: 1, 128>}, {pipeline_mode = #tpu.pipeline_mode<synchronous>, transform_indices = @transform_10, window_bounds = array<i64: 2, 8, 32>}, {pipeline_mode = #tpu.pipeline_mode<synchronous>, transform_indices = @transform_11, window_bounds = array<i64: 2, 8, 32>}, {transform_indices = @transform_12, window_bounds = array<i64: 1, 8, 128>}, {pipeline_mode = #tpu.pipeline_mode<synchronous>, transform_indices = @transform_13, window_bounds = array<i64: 2, 8, 32>}, {pipeline_mode = #tpu.pipeline_mode<synchronous>, transform_indices = @transform_14, window_bounds = array<i64: 2, 8, 32>}]} {
    %c0_i32 = arith.constant 0 : i32
    %0 = arith.cmpi eq, %arg0, %c0_i32 : i32
    %1 = arith.extui %0 : i1 to i32
    %c0_i32_0 = arith.constant 0 : i32
    %2 = arith.cmpi ne, %1, %c0_i32_0 : i32
    scf.if %2 {
      %c0_68 = arith.constant 0 : index
      %c0_69 = arith.constant 0 : index
      %c0_70 = arith.constant 0 : index
      %123 = vector.load %arg11[%c0_68, %c0_69, %c0_70] : memref<2x8x32xf32, #tpu.memory_space<vmem>>, vector<2x8x32xf32>
      %c0_71 = arith.constant 0 : index
      %c0_72 = arith.constant 0 : index
      %c0_73 = arith.constant 0 : index
      %124 = vector.load %arg16[%c0_71, %c0_72, %c0_73] : memref<2x8x32xf32, #tpu.memory_space<vmem>>, vector<2x8x32xf32>
      tpu.vector_store %arg16[%c0_71, %c0_72, %c0_73], %123 {strides = array<i32>} : memref<2x8x32xf32, #tpu.memory_space<vmem>>, vector<2x8x32xf32>,
      %c0_74 = arith.constant 0 : index
      %c0_75 = arith.constant 0 : index
      %c0_76 = arith.constant 0 : index
      %125 = vector.load %arg12[%c0_74, %c0_75, %c0_76] : memref<2x8x32xf32, #tpu.memory_space<vmem>>, vector<2x8x32xf32>
      %c0_77 = arith.constant 0 : index
      %c0_78 = arith.constant 0 : index
      %c0_79 = arith.constant 0 : index
      %126 = vector.load %arg17[%c0_77, %c0_78, %c0_79] : memref<2x8x32xf32, #tpu.memory_space<vmem>>, vector<2x8x32xf32>
      tpu.vector_store %arg17[%c0_77, %c0_78, %c0_79], %125 {strides = array<i32>} : memref<2x8x32xf32, #tpu.memory_space<vmem>>, vector<2x8x32xf32>,
    } else {
    }
    %3 = arith.index_cast %arg0 : i32 to index
    %c0 = arith.constant 0 : index
    %4 = memref.load %arg1[%3, %c0] : memref<1x8xi32, #tpu.memory_space<smem>>
    %5 = arith.index_cast %4 : i32 to index
    %c0_1 = arith.constant 0 : index
    %c0_2 = arith.constant 0 : index
    %6 = vector.load %arg2[%5, %c0_1, %c0_2] : memref<50x1x16xf32, #tpu.memory_space<vmem>>, vector<1x1x16xf32>
    %7 = vector.shape_cast %6 : vector<1x1x16xf32> to vector<1x16xf32>
    %8 = arith.index_cast %arg0 : i32 to index
    %c1 = arith.constant 1 : index
    %9 = memref.load %arg1[%8, %c1] : memref<1x8xi32, #tpu.memory_space<smem>>
    %10 = arith.index_cast %9 : i32 to index
    %c0_3 = arith.constant 0 : index
    %c0_4 = arith.constant 0 : index
    %11 = vector.load %arg2[%10, %c0_3, %c0_4] : memref<50x1x16xf32, #tpu.memory_space<vmem>>, vector<1x1x16xf32>
    %12 = vector.shape_cast %11 : vector<1x1x16xf32> to vector<1x16xf32>
    %13 = arith.index_cast %arg0 : i32 to index
    %c2 = arith.constant 2 : index
    %14 = memref.load %arg1[%13, %c2] : memref<1x8xi32, #tpu.memory_space<smem>>
    %15 = arith.index_cast %14 : i32 to index
    %c0_5 = arith.constant 0 : index
    %c0_6 = arith.constant 0 : index
    %16 = vector.load %arg2[%15, %c0_5, %c0_6] : memref<50x1x16xf32, #tpu.memory_space<vmem>>, vector<1x1x16xf32>
    %17 = vector.shape_cast %16 : vector<1x1x16xf32> to vector<1x16xf32>
    %18 = arith.index_cast %arg0 : i32 to index
    %c3 = arith.constant 3 : index
    %19 = memref.load %arg1[%18, %c3] : memref<1x8xi32, #tpu.memory_space<smem>>
    %20 = arith.index_cast %19 : i32 to index
    %c0_7 = arith.constant 0 : index
    %c0_8 = arith.constant 0 : index
    %21 = vector.load %arg2[%20, %c0_7, %c0_8] : memref<50x1x16xf32, #tpu.memory_space<vmem>>, vector<1x1x16xf32>
    %22 = vector.shape_cast %21 : vector<1x1x16xf32> to vector<1x16xf32>
    %23 = arith.index_cast %arg0 : i32 to index
    %c4 = arith.constant 4 : index
    %24 = memref.load %arg1[%23, %c4] : memref<1x8xi32, #tpu.memory_space<smem>>
    %25 = arith.index_cast %24 : i32 to index
    %c0_9 = arith.constant 0 : index
    %c0_10 = arith.constant 0 : index
    %26 = vector.load %arg2[%25, %c0_9, %c0_10] : memref<50x1x16xf32, #tpu.memory_space<vmem>>, vector<1x1x16xf32>
    %27 = vector.shape_cast %26 : vector<1x1x16xf32> to vector<1x16xf32>
    %28 = arith.index_cast %arg0 : i32 to index
    %c5 = arith.constant 5 : index
    %29 = memref.load %arg1[%28, %c5] : memref<1x8xi32, #tpu.memory_space<smem>>
    %30 = arith.index_cast %29 : i32 to index
    %c0_11 = arith.constant 0 : index
    %c0_12 = arith.constant 0 : index
    %31 = vector.load %arg2[%30, %c0_11, %c0_12] : memref<50x1x16xf32, #tpu.memory_space<vmem>>, vector<1x1x16xf32>
    %32 = vector.shape_cast %31 : vector<1x1x16xf32> to vector<1x16xf32>
    %33 = arith.index_cast %arg0 : i32 to index
    %c6 = arith.constant 6 : index
    %34 = memref.load %arg1[%33, %c6] : memref<1x8xi32, #tpu.memory_space<smem>>
    %35 = arith.index_cast %34 : i32 to index
    %c0_13 = arith.constant 0 : index
    %c0_14 = arith.constant 0 : index
    %36 = vector.load %arg2[%35, %c0_13, %c0_14] : memref<50x1x16xf32, #tpu.memory_space<vmem>>, vector<1x1x16xf32>
    %37 = vector.shape_cast %36 : vector<1x1x16xf32> to vector<1x16xf32>
    %38 = arith.index_cast %arg0 : i32 to index
    %c7 = arith.constant 7 : index
    %39 = memref.load %arg1[%38, %c7] : memref<1x8xi32, #tpu.memory_space<smem>>
    %40 = arith.index_cast %39 : i32 to index
    %c0_15 = arith.constant 0 : index
    %c0_16 = arith.constant 0 : index
    %41 = vector.load %arg2[%40, %c0_15, %c0_16] : memref<50x1x16xf32, #tpu.memory_space<vmem>>, vector<1x1x16xf32>
    %42 = vector.shape_cast %41 : vector<1x1x16xf32> to vector<1x16xf32>
    %43 = tpu.concatenate %7, %12, %17, %22, %27, %32, %37, %42 in 0 : vector<1x16xf32>, vector<1x16xf32>, vector<1x16xf32>, vector<1x16xf32>, vector<1x16xf32>, vector<1x16xf32>, vector<1x16xf32>, vector<1x16xf32> -> vector<8x16xf32>
    %c0_17 = arith.constant 0 : index
    %c0_18 = arith.constant 0 : index
    %c0_19 = arith.constant 0 : index
    %44 = vector.load %arg16[%c0_17, %c0_18, %c0_19] : memref<2x8x32xf32, #tpu.memory_space<vmem>>, vector<1x8x32xf32>
    %45 = vector.shape_cast %44 : vector<1x8x32xf32> to vector<8x32xf32>
    %c0_20 = arith.constant 0 : index
    %c0_21 = arith.constant 0 : index
    %c0_22 = arith.constant 0 : index
    %46 = vector.load %arg17[%c0_20, %c0_21, %c0_22] : memref<2x8x32xf32, #tpu.memory_space<vmem>>, vector<1x8x32xf32>
    %47 = vector.shape_cast %46 : vector<1x8x32xf32> to vector<8x32xf32>
    %c0_23 = arith.constant 0 : index
    %c0_24 = arith.constant 0 : index
    %48 = vector.load %arg3[%c0_23, %c0_24] : memref<16x128xf32, #tpu.memory_space<vmem>>, vector<16x128xf32>
    %cst = arith.constant dense<0.000000e+00> : vector<8x128xf32>
    %49 = tpu.matmul %43, %48, %cst {dimension_numbers = #tpu.dot_dimension_numbers<[1], [0], [0], [1], [0, 0, 1, 1], [], []>, precision = #tpu.contract_precision<fp32>} : vector<8x16xf32>, vector<16x128xf32>, vector<8x128xf32> -> vector<8x128xf32>
    %c0_25 = arith.constant 0 : index
    %c0_26 = arith.constant 0 : index
    %50 = vector.load %arg4[%c0_25, %c0_26] : memref<32x128xf32, #tpu.memory_space<vmem>>, vector<32x128xf32>
    %cst_27 = arith.constant dense<0.000000e+00> : vector<8x128xf32>
    %51 = tpu.matmul %45, %50, %cst_27 {dimension_numbers = #tpu.dot_dimension_numbers<[1], [0], [0], [1], [0, 0, 1, 1], [], []>, precision = #tpu.contract_precision<fp32>} : vector<8x32xf32>, vector<32x128xf32>, vector<8x128xf32> -> vector<8x128xf32>
    %52 = arith.addf %49, %51 : vector<8x128xf32>
    %c0_28 = arith.constant 0 : index
    %c0_29 = arith.constant 0 : index
    %53 = vector.load %arg5[%c0_28, %c0_29] : memref<1x128xf32, #tpu.memory_space<vmem>>, vector<1x128xf32>
    %54 = vector.broadcast %53 : vector<1x128xf32> to vector<8x128xf32>
    %55 = arith.addf %52, %54 : vector<8x128xf32>
    %56 = vector.extract_strided_slice %55 {offsets = [0, 0], sizes = [8, 96], strides = [1, 1]} : vector<8x128xf32> to vector<8x96xf32>
    %57 = arith.negf %56 : vector<8x96xf32>
    %58 = math.exp %57 : vector<8x96xf32>
    %cst_30 = arith.constant 1.000000e+00 : f32
    %59 = vector.broadcast %cst_30 : f32 to vector<8x96xf32>
    %60 = arith.addf %59, %58 : vector<8x96xf32>
    %61 = arith.divf %59, %60 : vector<8x96xf32>
    %62 = vector.extract_strided_slice %61 {offsets = [0, 0], sizes = [8, 32], strides = [1, 1]} : vector<8x96xf32> to vector<8x32xf32>
    %63 = vector.extract_strided_slice %61 {offsets = [0, 32], sizes = [8, 32], strides = [1, 1]} : vector<8x96xf32> to vector<8x32xf32>
    %64 = vector.extract_strided_slice %61 {offsets = [0, 64], sizes = [8, 32], strides = [1, 1]} : vector<8x96xf32> to vector<8x32xf32>
    %65 = vector.extract_strided_slice %55 {offsets = [0, 96], sizes = [8, 32], strides = [1, 1]} : vector<8x128xf32> to vector<8x32xf32>
    %66 = math.tanh %65 : vector<8x32xf32>
    %67 = arith.mulf %63, %47 : vector<8x32xf32>
    %68 = arith.mulf %62, %66 : vector<8x32xf32>
    %69 = arith.addf %67, %68 : vector<8x32xf32>
    %70 = math.tanh %69 : vector<8x32xf32>
    %71 = arith.mulf %64, %70 : vector<8x32xf32>
    %c0_31 = arith.constant 0 : index
    %c0_32 = arith.constant 0 : index
    %c0_33 = arith.constant 0 : index
    %72 = vector.load %arg16[%c0_31, %c0_32, %c0_33] : memref<2x8x32xf32, #tpu.memory_space<vmem>>, vector<1x8x32xf32>
    %73 = vector.shape_cast %72 : vector<1x8x32xf32> to vector<8x32xf32>
    %74 = vector.shape_cast %71 : vector<8x32xf32> to vector<1x8x32xf32>
    tpu.vector_store %arg16[%c0_31, %c0_32, %c0_33], %74 {strides = array<i32>} : memref<2x8x32xf32, #tpu.memory_space<vmem>>, vector<1x8x32xf32>,
    %c0_34 = arith.constant 0 : index
    %c0_35 = arith.constant 0 : index
    %c0_36 = arith.constant 0 : index
    %75 = vector.load %arg17[%c0_34, %c0_35, %c0_36] : memref<2x8x32xf32, #tpu.memory_space<vmem>>, vector<1x8x32xf32>
    %76 = vector.shape_cast %75 : vector<1x8x32xf32> to vector<8x32xf32>
    %77 = vector.shape_cast %69 : vector<8x32xf32> to vector<1x8x32xf32>
    tpu.vector_store %arg17[%c0_34, %c0_35, %c0_36], %77 {strides = array<i32>} : memref<2x8x32xf32, #tpu.memory_space<vmem>>, vector<1x8x32xf32>,
    %c1_37 = arith.constant 1 : index
    %c0_38 = arith.constant 0 : index
    %c0_39 = arith.constant 0 : index
    %78 = vector.load %arg16[%c1_37, %c0_38, %c0_39] : memref<2x8x32xf32, #tpu.memory_space<vmem>>, vector<1x8x32xf32>
    %79 = vector.shape_cast %78 : vector<1x8x32xf32> to vector<8x32xf32>
    %c1_40 = arith.constant 1 : index
    %c0_41 = arith.constant 0 : index
    %c0_42 = arith.constant 0 : index
    %80 = vector.load %arg17[%c1_40, %c0_41, %c0_42] : memref<2x8x32xf32, #tpu.memory_space<vmem>>, vector<1x8x32xf32>
    %81 = vector.shape_cast %80 : vector<1x8x32xf32> to vector<8x32xf32>
    %c0_43 = arith.constant 0 : index
    %c0_44 = arith.constant 0 : index
    %82 = vector.load %arg6[%c0_43, %c0_44] : memref<32x128xf32, #tpu.memory_space<vmem>>, vector<32x128xf32>
    %cst_45 = arith.constant dense<0.000000e+00> : vector<8x128xf32>
    %83 = tpu.matmul %71, %82, %cst_45 {dimension_numbers = #tpu.dot_dimension_numbers<[1], [0], [0], [1], [0, 0, 1, 1], [], []>, precision = #tpu.contract_precision<fp32>} : vector<8x32xf32>, vector<32x128xf32>, vector<8x128xf32> -> vector<8x128xf32>
    %c0_46 = arith.constant 0 : index
    %c0_47 = arith.constant 0 : index
    %84 = vector.load %arg7[%c0_46, %c0_47] : memref<32x128xf32, #tpu.memory_space<vmem>>, vector<32x128xf32>
    %cst_48 = arith.constant dense<0.000000e+00> : vector<8x128xf32>
    %85 = tpu.matmul %79, %84, %cst_48 {dimension_numbers = #tpu.dot_dimension_numbers<[1], [0], [0], [1], [0, 0, 1, 1], [], []>, precision = #tpu.contract_precision<fp32>} : vector<8x32xf32>, vector<32x128xf32>, vector<8x128xf32> -> vector<8x128xf32>
    %86 = arith.addf %83, %85 : vector<8x128xf32>
    %c0_49 = arith.constant 0 : index
    %c0_50 = arith.constant 0 : index
    %87 = vector.load %arg8[%c0_49, %c0_50] : memref<1x128xf32, #tpu.memory_space<vmem>>, vector<1x128xf32>
    %88 = vector.broadcast %87 : vector<1x128xf32> to vector<8x128xf32>
    %89 = arith.addf %86, %88 : vector<8x128xf32>
    %90 = vector.extract_strided_slice %89 {offsets = [0, 0], sizes = [8, 96], strides = [1, 1]} : vector<8x128xf32> to vector<8x96xf32>
    %91 = arith.negf %90 : vector<8x96xf32>
    %92 = math.exp %91 : vector<8x96xf32>
    %cst_51 = arith.constant 1.000000e+00 : f32
    %93 = vector.broadcast %cst_51 : f32 to vector<8x96xf32>
    %94 = arith.addf %93, %92 : vector<8x96xf32>
    %95 = arith.divf %93, %94 : vector<8x96xf32>
    %96 = vector.extract_strided_slice %95 {offsets = [0, 0], sizes = [8, 32], strides = [1, 1]} : vector<8x96xf32> to vector<8x32xf32>
    %97 = vector.extract_strided_slice %95 {offsets = [0, 32], sizes = [8, 32], strides = [1, 1]} : vector<8x96xf32> to vector<8x32xf32>
    %98 = vector.extract_strided_slice %95 {offsets = [0, 64], sizes = [8, 32], strides = [1, 1]} : vector<8x96xf32> to vector<8x32xf32>
    %99 = vector.extract_strided_slice %89 {offsets = [0, 96], sizes = [8, 32], strides = [1, 1]} : vector<8x128xf32> to vector<8x32xf32>
    %100 = math.tanh %99 : vector<8x32xf32>
    %101 = arith.mulf %97, %81 : vector<8x32xf32>
    %102 = arith.mulf %96, %100 : vector<8x32xf32>
    %103 = arith.addf %101, %102 : vector<8x32xf32>
    %104 = math.tanh %103 : vector<8x32xf32>
    %105 = arith.mulf %98, %104 : vector<8x32xf32>
    %c1_52 = arith.constant 1 : index
    %c0_53 = arith.constant 0 : index
    %c0_54 = arith.constant 0 : index
    %106 = vector.load %arg16[%c1_52, %c0_53, %c0_54] : memref<2x8x32xf32, #tpu.memory_space<vmem>>, vector<1x8x32xf32>
    %107 = vector.shape_cast %106 : vector<1x8x32xf32> to vector<8x32xf32>
    %108 = vector.shape_cast %105 : vector<8x32xf32> to vector<1x8x32xf32>
    tpu.vector_store %arg16[%c1_52, %c0_53, %c0_54], %108 {strides = array<i32>} : memref<2x8x32xf32, #tpu.memory_space<vmem>>, vector<1x8x32xf32>,
    %c1_55 = arith.constant 1 : index
    %c0_56 = arith.constant 0 : index
    %c0_57 = arith.constant 0 : index
    %109 = vector.load %arg17[%c1_55, %c0_56, %c0_57] : memref<2x8x32xf32, #tpu.memory_space<vmem>>, vector<1x8x32xf32>
    %110 = vector.shape_cast %109 : vector<1x8x32xf32> to vector<8x32xf32>
    %111 = vector.shape_cast %103 : vector<8x32xf32> to vector<1x8x32xf32>
    tpu.vector_store %arg17[%c1_55, %c0_56, %c0_57], %111 {strides = array<i32>} : memref<2x8x32xf32, #tpu.memory_space<vmem>>, vector<1x8x32xf32>,
    %c0_58 = arith.constant 0 : index
    %c0_59 = arith.constant 0 : index
    %112 = vector.load %arg9[%c0_58, %c0_59] : memref<32x128xf32, #tpu.memory_space<vmem>>, vector<32x128xf32>
    %cst_60 = arith.constant dense<0.000000e+00> : vector<8x128xf32>
    %113 = tpu.matmul %105, %112, %cst_60 {dimension_numbers = #tpu.dot_dimension_numbers<[1], [0], [0], [1], [0, 0, 1, 1], [], []>, precision = #tpu.contract_precision<fp32>} : vector<8x32xf32>, vector<32x128xf32>, vector<8x128xf32> -> vector<8x128xf32>
    %c0_61 = arith.constant 0 : index
    %c0_62 = arith.constant 0 : index
    %114 = vector.load %arg10[%c0_61, %c0_62] : memref<1x128xf32, #tpu.memory_space<vmem>>, vector<1x128xf32>
    %115 = vector.broadcast %114 : vector<1x128xf32> to vector<8x128xf32>
    %116 = arith.addf %113, %115 : vector<8x128xf32>
    %c0_63 = arith.constant 0 : index
    %c0_64 = arith.constant 0 : index
    %c0_65 = arith.constant 0 : index
    %117 = vector.load %arg13[%c0_63, %c0_64, %c0_65] : memref<1x8x128xf32, #tpu.memory_space<vmem>>, vector<1x8x128xf32>
    %118 = vector.shape_cast %117 : vector<1x8x128xf32> to vector<8x128xf32>
    %119 = vector.shape_cast %116 : vector<8x128xf32> to vector<1x8x128xf32>
    tpu.vector_store %arg13[%c0_63, %c0_64, %c0_65], %119 {strides = array<i32>} : memref<1x8x128xf32, #tpu.memory_space<vmem>>, vector<1x8x128xf32>,
    %c0_i32_66 = arith.constant 0 : i32
    %120 = arith.cmpi eq, %arg0, %c0_i32_66 : i32
    %121 = arith.extui %120 : i1 to i32
    %c0_i32_67 = arith.constant 0 : i32
    %122 = arith.cmpi ne, %121, %c0_i32_67 : i32
    scf.if %122 {
      %c0_68 = arith.constant 0 : index
      %c0_69 = arith.constant 0 : index
      %c0_70 = arith.constant 0 : index
      %123 = vector.load %arg16[%c0_68, %c0_69, %c0_70] : memref<2x8x32xf32, #tpu.memory_space<vmem>>, vector<2x8x32xf32>
      %c0_71 = arith.constant 0 : index
      %c0_72 = arith.constant 0 : index
      %c0_73 = arith.constant 0 : index
      %124 = vector.load %arg14[%c0_71, %c0_72, %c0_73] : memref<2x8x32xf32, #tpu.memory_space<vmem>>, vector<2x8x32xf32>
      tpu.vector_store %arg14[%c0_71, %c0_72, %c0_73], %123 {strides = array<i32>} : memref<2x8x32xf32, #tpu.memory_space<vmem>>, vector<2x8x32xf32>,
      %c0_74 = arith.constant 0 : index
      %c0_75 = arith.constant 0 : index
      %c0_76 = arith.constant 0 : index
      %125 = vector.load %arg17[%c0_74, %c0_75, %c0_76] : memref<2x8x32xf32, #tpu.memory_space<vmem>>, vector<2x8x32xf32>
      %c0_77 = arith.constant 0 : index
      %c0_78 = arith.constant 0 : index
      %c0_79 = arith.constant 0 : index
      %126 = vector.load %arg15[%c0_77, %c0_78, %c0_79] : memref<2x8x32xf32, #tpu.memory_space<vmem>>, vector<2x8x32xf32>
      tpu.vector_store %arg15[%c0_77, %c0_78, %c0_79], %125 {strides = array<i32>} : memref<2x8x32xf32, #tpu.memory_space<vmem>>, vector<2x8x32xf32>,
    } else {
    }
    return
  }
  func.func @transform_0(%arg0: i32) -> (i32, i32) {
    %c0_i32 = arith.constant 0 : i32
    %c0_i32_0 = arith.constant 0 : i32
    %c0_i32_1 = arith.constant 0 : i32
    return %c0_i32, %c0_i32_0 : i32, i32
  }
  func.func @transform_1(%arg0: i32) -> (i32, i32, i32) {
    %c0_i32 = arith.constant 0 : i32
    %c0_i32_0 = arith.constant 0 : i32
    %c0_i32_1 = arith.constant 0 : i32
    %c0_i32_2 = arith.constant 0 : i32
    return %c0_i32, %c0_i32_0, %c0_i32_1 : i32, i32, i32
  }
  func.func @transform_2(%arg0: i32) -> (i32, i32) {
    %c0_i32 = arith.constant 0 : i32
    %c0_i32_0 = arith.constant 0 : i32
    %c0_i32_1 = arith.constant 0 : i32
    return %c0_i32, %c0_i32_0 : i32, i32
  }
  func.func @transform_3(%arg0: i32) -> (i32, i32) {
    %c0_i32 = arith.constant 0 : i32
    %c0_i32_0 = arith.constant 0 : i32
    %c0_i32_1 = arith.constant 0 : i32
    return %c0_i32, %c0_i32_0 : i32, i32
  }
  func.func @transform_4(%arg0: i32) -> (i32, i32) {
    %c0_i32 = arith.constant 0 : i32
    %c0_i32_0 = arith.constant 0 : i32
    %c0_i32_1 = arith.constant 0 : i32
    return %c0_i32, %c0_i32_0 : i32, i32
  }
  func.func @transform_5(%arg0: i32) -> (i32, i32) {
    %c0_i32 = arith.constant 0 : i32
    %c0_i32_0 = arith.constant 0 : i32
    %c0_i32_1 = arith.constant 0 : i32
    return %c0_i32, %c0_i32_0 : i32, i32
  }
  func.func @transform_6(%arg0: i32) -> (i32, i32) {
    %c0_i32 = arith.constant 0 : i32
    %c0_i32_0 = arith.constant 0 : i32
    %c0_i32_1 = arith.constant 0 : i32
    return %c0_i32, %c0_i32_0 : i32, i32
  }
  func.func @transform_7(%arg0: i32) -> (i32, i32) {
    %c0_i32 = arith.constant 0 : i32
    %c0_i32_0 = arith.constant 0 : i32
    %c0_i32_1 = arith.constant 0 : i32
    return %c0_i32, %c0_i32_0 : i32, i32
  }
  func.func @transform_8(%arg0: i32) -> (i32, i32) {
    %c0_i32 = arith.constant 0 : i32
    %c0_i32_0 = arith.constant 0 : i32
    %c0_i32_1 = arith.constant 0 : i32
    return %c0_i32, %c0_i32_0 : i32, i32
  }
  func.func @transform_9(%arg0: i32) -> (i32, i32) {
    %c0_i32 = arith.constant 0 : i32
    %c0_i32_0 = arith.constant 0 : i32
    %c0_i32_1 = arith.constant 0 : i32
    return %c0_i32, %c0_i32_0 : i32, i32
  }
  func.func @transform_10(%arg0: i32) -> (i32, i32, i32) {
    %c0_i32 = arith.constant 0 : i32
    %c0_i32_0 = arith.constant 0 : i32
    %c0_i32_1 = arith.constant 0 : i32
    %c0_i32_2 = arith.constant 0 : i32
    return %c0_i32, %c0_i32_0, %c0_i32_1 : i32, i32, i32
  }
  func.func @transform_11(%arg0: i32) -> (i32, i32, i32) {
    %c0_i32 = arith.constant 0 : i32
    %c0_i32_0 = arith.constant 0 : i32
    %c0_i32_1 = arith.constant 0 : i32
    %c0_i32_2 = arith.constant 0 : i32
    return %c0_i32, %c0_i32_0, %c0_i32_1 : i32, i32, i32
  }
  func.func @transform_12(%arg0: i32) -> (i32, i32, i32) {
    %c0_i32 = arith.constant 0 : i32
    %c0_i32_0 = arith.constant 0 : i32
    %c0_i32_1 = arith.constant 0 : i32
    return %arg0, %c0_i32, %c0_i32_0 : i32, i32, i32
  }
  func.func @transform_13(%arg0: i32) -> (i32, i32, i32) {
    %c0_i32 = arith.constant 0 : i32
    %c0_i32_0 = arith.constant 0 : i32
    %c0_i32_1 = arith.constant 0 : i32
    %c0_i32_2 = arith.constant 0 : i32
    return %c0_i32, %c0_i32_0, %c0_i32_1 : i32, i32, i32
  }
  func.func @transform_14(%arg0: i32) -> (i32, i32, i32) {
    %c0_i32 = arith.constant 0 : i32
    %c0_i32_0 = arith.constant 0 : i32
    %c0_i32_1 = arith.constant 0 : i32
    %c0_i32_2 = arith.constant 0 : i32
    return %c0_i32, %c0_i32_0, %c0_i32_1 : i32, i32, i32
  }
}

</mosaic_0001>

<bundles_post_ra>
// kernel: decoder_forward.1
= control target key start
LH: loop header
LB: loop body
LE: loop exit
PB: predicated region body
PF: predicated region fallthrough
CT: control target
= control target key end

     0   :  { %20 = vsyncpa [#allocation6], 0  ;;  %s4121_s0 = inlined_call_operand.hbm [shape: s32[1,8], index: 0, kind: input, shape index: {}]   ;;  %s4122_s1 = inlined_call_operand.vmem [shape: f32[50,1,16], index: 1, kind: input, shape index: {}]   ;;  %s4123_s2 = inlined_call_operand.hbm [shape: f32[16,128], index: 2, kind: input, shape index: {}]   ;;  %s4124_s3 = inlined_call_operand.vmem [shape: f32[32,128], index: 3, kind: input, shape index: {}]   ;;  %s4125_s4 = inlined_call_operand.hbm [shape: f32[1,128], index: 4, kind: input, shape index: {}]   ;;  %s4126_s5 = inlined_call_operand.vmem [shape: f32[32,128], index: 5, kind: input, shape index: {}]   ;;  %s4127_s6 = inlined_call_operand.vmem [shape: f32[32,128], index: 6, kind: input, shape index: {}]   ;;  %s4128_s7 = inlined_call_operand.hbm [shape: f32[1,128], index: 7, kind: input, shape index: {}]   ;;  %s4129_s8 = inlined_call_operand.vmem [shape: f32[32,128], index: 8, kind: input, shape index: {}]   ;;  %s4130_s9 = inlined_call_operand.vmem [shape: f32[1,128], index: 9, kind: input, shape index: {}]   ;;  %s4131_s10 = inlined_call_operand.vmem [shape: f32[2,8,32], index: 10, kind: input, shape index: {}, may-alias: {10,13}]   ;;  %s4132_s11 = inlined_call_operand.vmem [shape: f32[2,8,32], index: 11, kind: input, shape index: {}, may-alias: {11,14}]   ;;  %s4133_s12 = inlined_call_operand.vmem [shape: f32[1,8,128], index: 12, kind: output, shape index: {0}]   ;;  %s4134_s13 = inlined_call_operand.vmem [shape: f32[2,8,32], index: 13, kind: output, shape index: {1}, may-alias: {10,13}]   ;;  %s4135_s14 = inlined_call_operand.vmem [shape: f32[2,8,32], index: 14, kind: output, shape index: {2}, may-alias: {11,14}]  }
   0x1   :  { %21 = vsyncpa [#allocation5], 0 }
   0x2   :  { %22 = vsyncpa [#allocation9], 0  ;;  %s3511_s29 = smov [#allocation8]   ;;  %s3512_s15 = smov [#allocation7]  }
   0x3   :  { %s53_s30 = sshll.u32 %s3511_s29, 4  ;;  %s38_s16 = sshll.u32 %s3512_s15, 4  ;;  %s54_s30 = int_to_ptr.vmem [resolvable:$true] %s53_s30  ;;  %s39_s16 = int_to_ptr.vmem [resolvable:$true] %s38_s16 }
   0x4   :  { %s3429_s19 = scalar_lea.hbm %s4125_s4, 16 }
   0x5   :  { %p3430_p0 = scmp.ne.s32.totalorder %s4125_s4, %s3429_s19  ;;  %p3433_p1 = scmp.lt.u32.totalorder %s3429_s19, %s4125_s4 }
   0x7   :  { %p3435_p2 = pnand %p3433_p1, %p3430_p0 }
   0x9   :  { %3438 = shalt.err (!%p3435_p2)
}
   0xa   :  { %s3439_s24 = scalar_lea.vmem %s54_s30, 16  ;;  %s3443_s25 = scalar_lea.vmem %s54_s30, 32 }
   0xb   :  { %p3440_p3 = scmp.ne.s32.totalorder %s54_s30, %s3439_s24  ;;  %p3444_p4 = scmp.lt.s32.totalorder %s54_s30, %s54_s30 }
   0xc   :  { %p3445_p5 = scmp.lt.s32.totalorder %s3443_s25, %s3439_s24 }
   0xe   :  { %p3446_p6 = por %p3445_p5, %p3444_p4 }
  0x10   :  { %p3447_p7 = pnand %p3446_p6, %p3440_p3 }
  0x12   :  { %3450 = shalt.err (!%p3447_p7)
}
  0x13   :  { %56 = dma.hbm_to_vmem [thread:$0]  %s4125_s4, 16, %s54_s30, [#allocation9]  }
  0x14   :  { %s3451_s15 = scalar_lea.hbm %s4121_s0, 16 }
  0x15   :  { %p3452_p8 = scmp.ne.s32.totalorder %s4121_s0, %s3451_s15  ;;  %p3455_p9 = scmp.lt.u32.totalorder %s3451_s15, %s4121_s0 }
  0x17   :  { %p3457_p10 = pnand %p3455_p9, %p3452_p8 }
  0x19   :  { %3460 = shalt.err (!%p3457_p10)
}
  0x1a   :  { %s3513_s21 = smov [#allocation4]   ;;  %s3461_s24 = scalar_lea.hbm %s4123_s2, 256 }
  0x1b   :  { %30 = dma.hbm_to_smem %s4121_s0, 16, %s3513_s21, [#allocation6]  }
  0x1c   :  { %p3462_p11 = scmp.ne.s32.totalorder %s4123_s2, %s3461_s24  ;;  %p3465_p12 = scmp.lt.u32.totalorder %s3461_s24, %s4123_s2 }
  0x1e   :  { %p3467_p13 = pnand %p3465_p12, %p3462_p11 }
  0x20   :  { %3470 = shalt.err (!%p3467_p13)
}
  0x21   :  { %s3471_s29 = scalar_lea.vmem %s39_s16, 256  ;;  %p3476_p1 = scmp.lt.s32.totalorder %s39_s16, %s39_s16 }
  0x22   :  { %p3472_p0 = scmp.ne.s32.totalorder %s39_s16, %s3471_s29  ;;  %p3477_p2 = scmp.lt.s32.totalorder %s3471_s29, %s3471_s29 }
  0x24   :  { %p3478_p3 = por %p3477_p2, %p3476_p1 }
  0x26   :  { %p3479_p4 = pnand %p3478_p3, %p3472_p0 }
  0x28   :  { %3482 = shalt.err (!%p3479_p4)
}
  0x29   :  { %s3514_s0 = smov 128   ;;  %s3515_s15 = smov 8  }
  0x2a   :  { %44 = dma.hbm_to_vmem [thread:$0]  %s4123_s2, 256, %s39_s16, [#allocation5], %s3514_s0, %s3514_s0, %s3515_s15  }
  0x2b   :  { %s3516_s19 = smov [#allocation10]   ;;  %s3483_s23 = scalar_lea.hbm %s4128_s7, 16 }
  0x2c   :  { %s67_s20 = sshll.u32 %s3516_s19, 4  ;;  %p3484_p5 = scmp.ne.s32.totalorder %s4128_s7, %s3483_s23  ;;  %s68_s20 = int_to_ptr.vmem [resolvable:$true] %s67_s20 }
  0x2d   :  { %p3487_p6 = scmp.lt.u32.totalorder %s3483_s23, %s4128_s7 }
  0x2f   :  { %p3489_p7 = pnand %p3487_p6, %p3484_p5 }
  0x31   :  { %3492 = shalt.err (!%p3489_p7)
}
  0x32   :  { %s3493_s26 = scalar_lea.vmem %s68_s20, 16  ;;  %s3497_s2 = scalar_lea.vmem %s68_s20, 32 }
  0x33   :  { %p3494_p8 = scmp.ne.s32.totalorder %s68_s20, %s3493_s26  ;;  %p3498_p9 = scmp.lt.s32.totalorder %s68_s20, %s68_s20 }
  0x34   :  { %p3499_p10 = scmp.lt.s32.totalorder %s3497_s2, %s3493_s26 }
  0x36   :  { %p3500_p11 = por %p3499_p10, %p3498_p9 }
  0x38   :  { %p3501_p12 = pnand %p3500_p11, %p3494_p8 }
  0x3a   :  { %3504 = shalt.err (!%p3501_p12)
}
  0x3b   :  { %70 = dma.hbm_to_vmem [thread:$0]  %s4128_s7, 16, %s68_s20, [#allocation9]  }
  0x3c   :  { %3505 = dma.done.wait [#allocation6], 16  }
  0x3d   :  { %3506 = vsyncadd [#allocation6], 4294967280 }
  0x3e   :  { %3507 = dma.done.wait [#allocation5], 256  }
  0x3f   :  { %3508 = vsyncadd [#allocation5], 4294967040 }
  0x40   :  { %3509 = dma.done.wait [#allocation9], 32  }
  0x41   :  { %3510 = vsyncadd [#allocation9], 4294967264 }
  0x42   :  { %91 = sfence }
  0x43   :  { %v197_v0 = vld [vmem:[%s4124_s3] sm:$0xff]  ;;  %v198_v1 = vld [vmem:[%s4124_s3 + $0x8] sm:$0xff]  ;;  %v199_v2 = vld [vmem:[%s4124_s3 + $0x10] sm:$0xff]  ;;  %v3517_v3 = vmov 0.0|0.0   ;;  %vm3518_vm0 = vmmov 0   ;;  %v3519_v8 = vmov 0.0  }
  0x44   :  { %3228 = vmatprep.subr.bf16.mxu1 %v3517_v3  ;;  %v206_v4 = vand.u32 4294901760, %v197_v0  ;;  %v209_v5 = vand.u32 4294901760, %v198_v1  ;;  %v200_v6 = vld [vmem:[%s4124_s3 + $0x18] sm:$0xff]  ;;  %v212_v7 = vand.u32 4294901760, %v199_v2  ;;  %2930 = vmatprep.mubr.msk.f32.mxu1 %vm3518_vm0, %v3519_v8  ;;  %v96_v9 = vld [vmem:[%s4131_s10] sm:$0xff]  ;;  %vm98_vm1 = vcmask 261120  }
  0x45   :  { %v215_v10 = vand.u32 4294901760, %v200_v6  ;;  %99 = vst.msk [vmem:[#allocation2] sm:$0xff] %vm98_vm1, %v96_v9  ;;  %3264 = vmatprep.subr.bf16.mxu0 %v3517_v3  ;;  %v3666_v11 = vld [vmem:[#allocation7] sm:$0xff]  ;;  %v3668_v12 = vld [vmem:[#allocation7 + $0x8] sm:$0xff]  ;;  %2992 = vmatprep.mubr.msk.f32.mxu0 %vm3518_vm0, %v3519_v8  ;;  %s3672_s3 = sld [smem:[#allocation4]]  ;;  %s3680_s22 = sld [smem:[#allocation4 + $0x1]] }
  0x46   :  { %v3674_v13 = vpack.c.bf16 %v209_v5, %v206_v4  ;;  %v3676_v14 = vsub.f32 %v197_v0, %v206_v4  ;;  %v3678_v15 = vsub.f32 %v198_v1, %v209_v5  ;;  %s3682_s23 = sld [smem:[#allocation4 + $0x2]]  ;;  %v3684_v16 = vsub.f32 %v199_v2, %v212_v7  ;;  %s3690_s4 = sld [smem:[#allocation4 + $0x3]] }
  0x47   :  { %v3686_v17 = vsub.f32 %v200_v6, %v215_v10  ;;  %v695_v18 = vand.u32 4294901760, %v3666_v11  ;;  %v698_v19 = vand.u32 4294901760, %v3668_v12  ;;  %s3692_s30 = sld [smem:[#allocation4 + $0x4]]  ;;  %v3695_v20 = vpack.c.bf16 %v215_v10, %v212_v7  ;;  %s3698_s24 = sld [smem:[#allocation4 + $0x5]] }
  0x48   :  { %3230 = vmatpush3.bf16.msra.mxu1 %v3674_v13  ;;  %v287_v21 = vand.u32 4294901760, %v3676_v14  ;;  %v294_v22 = vand.u32 4294901760, %v3678_v15  ;;  %s3708_s25 = sld [smem:[#allocation4 + $0x6]]  ;;  %s3710_s26 = sld [smem:[#allocation4 + $0x7]]  ;;  %v301_v24 = vand.u32 4294901760, %v3684_v16  ;;  %vm179_vm2 = vcmask 1040384  }
  0x49   :  { %3231 = vmatprep.subr.bf16.mxu1 %v3517_v3  ;;  %v3706_v23 = vpack.c.bf16 %v698_v19, %v695_v18  ;;  %v308_v25 = vand.u32 4294901760, %v3686_v17  ;;  %vm181_vm3 = vcmask 1041408   ;;  %vm183_vm4 = vcmask 1042432  }
  0x4a   :  { %v288_v27 = vsub.f32 %v3676_v14, %v287_v21  ;;  %v295_v30 = vsub.f32 %v3678_v15, %v294_v22  ;;  %v302_v36 = vsub.f32 %v3684_v16, %v301_v24  ;;  %vm185_vm5 = vcmask 1043456  }
  0x4b   :  { %3266 = vmatpush3.bf16.msra.mxu0 %v3706_v23  ;;  %s107_s27 = scalar_lea.vmem %s4122_s1, %s3672_s3  ;;  %s111_s0 = scalar_lea.vmem %s4122_s1, %s3680_s22  ;;  %v309_v37 = vsub.f32 %v3686_v17, %v308_v25  ;;  %vm187_vm6 = vcmask 1044480   ;;  %vm189_vm7 = vcmask 1045504   ;;  %vm191_vm8 = vcmask 1046528  }
  0x4c   :  { %3233 = vmatpush3.bf16.msra.mxu1 %v3695_v20  ;;  %v193_v26 = vld [vmem:[#allocation2] sm:$0xff]  ;;  %s115_s18 = scalar_lea.vmem %s4122_s1, %s3682_s23  ;;  %3270 = vmatprep.subr.bf16.mxu0 %v3517_v3  ;;  %s119_s20 = scalar_lea.vmem %s4122_s1, %s3690_s4  ;;  %v289_v41 = vand.u32 4294901760, %v288_v27  ;;  %v296_v43 = vand.u32 4294901760, %v295_v30  ;;  %vm690_vm9 = vcmask 130048   ;;  %v303_v53 = vand.u32 4294901760, %v302_v36 }
  0x4d   :  { %v108_v28 = vld [vmem:[%s107_s27] sm:$0x1]  ;;  %3234 = vmatprep.subr.bf16.mxu1 %v3517_v3  ;;  %v203_v29 = vsel %vm98_vm1, %v193_v26, 0  ;;  %s123_s22 = scalar_lea.vmem %s4122_s1, %s3692_s30  ;;  %s127_s16 = scalar_lea.vmem %s4122_s1, %s3698_s24  ;;  %v310_v54 = vand.u32 4294901760, %v309_v37  ;;  %v3241_v62 = vpack.c.bf16 %v3678_v15, %v3676_v14  ;;  %v773_v63 = vsub.f32 %v3666_v11, %v695_v18 }
  0x4e   :  { %v2772_v31 = vld [vmem:[%s111_s0] ss:$0 sm:$0xff]  ;;  %v3745_v32 = vand.u32 4294901760, %v203_v29  ;;  %s131_s27 = scalar_lea.vmem %s4122_s1, %s3708_s25  ;;  %s135_s24 = scalar_lea.vmem %s4122_s1, %s3710_s26  ;;  %v3235_v52 = vpack.c.bf16 %v296_v43, %v289_v41  ;;  %v780_v0 = vsub.f32 %v3668_v12, %v698_v19  ;;  %v3244_v5 = vpack.c.bf16 %v3686_v17, %v3684_v16 }
  0x4f   :  { %v2773_v33 = vld [vmem:[%s115_s18] ss:$0 sm:$0xff]  ;;  %v180_v35 = vsel %vm179_vm2, %v108_v28, %v2772_v31  ;;  %v3238_v59 = vpack.c.bf16 %v310_v54, %v303_v53  ;;  %v774_v6 = vand.u32 4294901760, %v773_v63  ;;  %v3253_v10 = vpack.c.bf16 %v294_v22, %v287_v21  ;;  %s3520_s26 = smov 32   ;;  %s3522_s1 = smov 96  }
  0x50   :  { %v2774_v34 = vld [vmem:[%s119_s20] ss:$0 sm:$0xff]  ;;  %v182_v39 = vsel %vm181_vm3, %v180_v35, %v2773_v33  ;;  %v3767_v40 = vsub.f32 %v203_v29, %v3745_v32  ;;  %v3271_v4 = vpack.c.bf16 %v780_v0, %v773_v63  ;;  %v781_v7 = vand.u32 4294901760, %v780_v0 }
  0x51   :  { %v2775_v38 = vld [vmem:[%s123_s22] ss:$0 sm:$0xff]  ;;  %v184_v45 = vsel %vm183_vm4, %v182_v39, %v2774_v34  ;;  %v3256_v11 = vpack.c.bf16 %v308_v25, %v301_v24  ;;  %v775_v12 = vsub.f32 %v773_v63, %v774_v6 }
  0x52   :  { %v2776_v42 = vld [vmem:[%s127_s16] ss:$0 sm:$0xff]  ;;  %v276_v46 = vand.u32 4294901760, %v3767_v40  ;;  %v186_v48 = vsel %vm185_vm5, %v184_v45, %v2775_v38  ;;  %v3277_v9 = vpack.c.bf16 %v781_v7, %v774_v6  ;;  %v782_v14 = vsub.f32 %v780_v0, %v781_v7  ;;  %v1209_v6 = vld [vmem:[%s4127_s6 + $0x10] sm:$0xff] }
  0x53   :  { %v2777_v44 = vld [vmem:[%s131_s27] ss:$0 sm:$0xff]  ;;  %v188_v49 = vsel %vm187_vm6, %v186_v48, %v2776_v42  ;;  %v776_v15 = vand.u32 4294901760, %v775_v12  ;;  %v97_v12 = vld [vmem:[%s4131_s10 + $0x8] sm:$0xff] }
  0x54   :  { %v2778_v47 = vld [vmem:[%s135_s24] ss:$0 sm:$0xff]  ;;  %v277_v50 = vsub.f32 %v3767_v40, %v276_v46  ;;  %v190_v51 = vsel %vm189_vm7, %v188_v49, %v2777_v44  ;;  %v783_v16 = vand.u32 4294901760, %v782_v14  ;;  %100 = vst.msk [vmem:[#allocation2 + $0x8] sm:$0xff] %vm98_vm1, %v97_v12 }
  0x55   :  { %v192_v55 = vsel %vm191_vm8, %v190_v51, %v2778_v47  ;;  %v2779_v51 = vld [vmem:[#allocation8] ss:$0 sm:$0xff] }
  0x56   :  { %v278_v56 = vand.u32 4294901760, %v277_v50  ;;  %v692_v57 = vsel %vm690_vm9, %v192_v55, 0  ;;  %v3268_v17 = vpack.c.bf16 %v783_v16, %v776_v15 }
  0x57   :  { %v3771_v58 = vand.u32 4294901760, %v692_v57 }
  0x58   :  { %2931 = vmatmul.mubr.f32.vlgmr.msra.gmra.mrb[0].mxu1 %v278_v56 }
  0x59   :  { %3236 = vmatpush3.bf16.msra.mxu1 %v3235_v52  ;;  %2941 = vmatprep.mubr.msk.f32.mxu1 %vm3518_vm0, %v3519_v8  ;;  %v3776_v60 = vsub.f32 %v692_v57, %v3771_v58 }
  0x5a   :  { %3237 = vmatprep.subr.bf16.mxu1 %v3517_v3 }
  0x5b   :  { %v763_v61 = vand.u32 4294901760, %v3776_v60 }
  0x5d   :  { %3239 = vmatpush3.bf16.msra.mxu1 %v3238_v59  ;;  %v764_v1 = vsub.f32 %v3776_v60, %v763_v61 }
  0x5e   :  { %3240 = vmatprep.subr.bf16.mxu1 %v3517_v3 }
  0x5f   :  { %v765_v2 = vand.u32 4294901760, %v764_v1 }
  0x60   :  { %2942 = vmatmul.mubr.f32.vlgmr.msra.gmra.mrb[2].mxu1 %v3745_v32 }
  0x61   :  { %3242 = vmatpush3.bf16.msra.mxu1 %v3241_v62  ;;  %2952 = vmatprep.mubr.msk.f32.mxu1 %vm3518_vm0, %v3519_v8 }
  0x62   :  { %3243 = vmatprep.subr.bf16.mxu1 %v3517_v3  ;;  %2993 = vmatmul.mubr.f32.vlgmr.msra.gmra.mrb[0].mxu0 %v765_v2 }
  0x63   :  { %3272 = vmatpush3.bf16.msra.mxu0 %v3271_v4  ;;  %3006 = vmatprep.mubr.msk.f32.mxu0 %vm3518_vm0, %v3519_v8  ;;  %v1207_v4 = vld [vmem:[%s4127_s6] sm:$0xff] }
  0x64   :  { %3276 = vmatprep.subr.bf16.mxu0 %v3517_v3  ;;  %v1215_v7 = vand.u32 4294901760, %v1207_v4 }
  0x65   :  { %3245 = vmatpush3.bf16.msra.mxu1 %v3244_v5  ;;  %v1208_v5 = vld [vmem:[%s4127_s6 + $0x8] sm:$0xff] }
  0x66   :  { %3246 = vmatprep.subr.bf16.mxu1 %v3517_v3  ;;  %3007 = vmatmul.mubr.f32.vlgmr.msra.gmra.mrb[2].mxu0 %v3776_v60  ;;  %v3881_v16 = vsub.f32 %v1207_v4, %v1215_v7 }
  0x67   :  { %3278 = vmatpush3.bf16.msra.mxu0 %v3277_v9  ;;  %3020 = vmatprep.mubr.msk.f32.mxu0 %vm3518_vm0, %v3519_v8  ;;  %v1218_v9 = vand.u32 4294901760, %v1208_v5 }
  0x68   :  { %2953 = vmatmul.mubr.f32.vlgmr.msra.gmra.mrb[4].mxu1 %v3767_v40  ;;  %3282 = vmatprep.subr.bf16.mxu0 %v3517_v3 }
  0x69   :  { %3248 = vmatpush3.bf16.msra.mxu1 %v3674_v13  ;;  %2963 = vmatprep.mubr.msk.f32.mxu1 %vm3518_vm0, %v3519_v8  ;;  %v3879_v15 = vpack.c.bf16 %v1218_v9, %v1215_v7 }
  0x6a   :  { %3249 = vmatprep.subr.bf16.mxu1 %v3517_v3  ;;  %3021 = vmatmul.mubr.f32.vlgmr.msra.gmra.mrb[4].mxu0 %v3771_v58 }
  0x6b   :  { %3038 = vmatprep.mubr.msk.f32.mxu0 %vm3518_vm0, %v3519_v8  ;;  %3284 = vmatpush3.bf16.msra.mxu0 %v3879_v15 }
  0x6c   :  { %3285 = vmatprep.subr.bf16.mxu0 %v3517_v3 }
  0x6d   :  { %3251 = vmatpush3.bf16.msra.mxu1 %v3695_v20 }
  0x6e   :  { %3252 = vmatprep.subr.bf16.mxu1 %v3517_v3 }
  0x70   :  { %2964 = vmatmul.mubr.f32.vlgmr.msra.gmra.mrb[6].mxu1 %v276_v46 }
  0x71   :  { %3254 = vmatpush3.bf16.msra.mxu1 %v3253_v10  ;;  %2974 = vmatprep.mubr.msk.f32.mxu1 %vm3518_vm0, %v3519_v8  ;;  %v1210_v10 = vld [vmem:[%s4127_s6 + $0x18] sm:$0xff] }
  0x72   :  { %3255 = vmatprep.subr.bf16.mxu1 %v3517_v3  ;;  %v1224_v14 = vand.u32 4294901760, %v1210_v10 }
  0x75   :  { %3257 = vmatpush3.bf16.msra.mxu1 %v3256_v11  ;;  %v1221_v11 = vand.u32 4294901760, %v1209_v6 }
  0x76   :  { %3258 = vmatprep.subr.bf16.mxu1 %v3517_v3 }
  0x78   :  { %2975 = vmatmul.mubr.f32.vlgmr.msra.gmra.mrb[8].mxu1 %v3745_v32 }
  0x79   :  { %3260 = vmatpush3.bf16.msra.mxu1 %v3674_v13  ;;  %2985 = vmatprep.mubr.msk.f32.mxu1 %vm3518_vm0, %v3519_v8  ;;  %v101_v13 = vld [vmem:[%s4132_s11] sm:$0xff] }
  0x7a   :  { %3261 = vmatprep.subr.bf16.mxu1 %v3517_v3  ;;  %103 = vst.msk [vmem:[#allocation3] sm:$0xff] %vm98_vm1, %v101_v13  ;;  %v3885_v13 = vsub.f32 %v1209_v6, %v1221_v11 }
  0x7d   :  { %3263 = vmatpush3.bf16.msra.mxu1 %v3695_v20 }
  0x7e   :  { %3267 = vmatprep.subr.bf16.mxu1 %v3517_v3 }
  0x80   :  { %2986 = vmatmul.mubr.f32.vlgmr.msra.gmra.mrb[10].mxu1 %v3745_v32 }
  0x81   :  { %3269 = vmatpush3.bf16.msra.mxu1 %v3268_v17  ;;  %2999 = vmatprep.mubr.msk.f32.mxu1 %vm3518_vm0, %v3519_v8  ;;  %v194_v56 = vld [vmem:[#allocation3] sm:$0xff]  ;;  %v3883_v17 = vsub.f32 %v1208_v5, %v1218_v9 }
  0x82   :  { %3273 = vmatprep.subr.bf16.mxu1 %v3517_v3 }
  0x84   :  { %3000 = vmatmul.mubr.f32.vlgmr.msra.gmra.mrb[12].mxu1 %v3771_v58 }
  0x85   :  { %3275 = vmatpush3.bf16.msra.mxu1 %v3706_v23  ;;  %3013 = vmatprep.mubr.msk.f32.mxu1 %vm3518_vm0, %v3519_v8 }
  0x86   :  { %3279 = vmatprep.subr.bf16.mxu1 %v3517_v3 }
  0x88   :  { %3014 = vmatmul.mubr.f32.vlgmr.msra.gmra.mrb[14].mxu1 %v763_v61 }
  0x89   :  { %3281 = vmatpush3.bf16.msra.mxu1 %v3706_v23  ;;  %3027 = vmatprep.mubr.msk.f32.mxu1 %vm3518_vm0, %v3519_v8 }
  0x8a   :  { %3288 = vmatprep.subr.bf16.mxu1 %v3517_v3 }
  0x8c   :  { %3028 = vmatmul.mubr.f32.vlgmr.msra.gmra.mrb[16].mxu1 %v3771_v58 }
  0x8d   :  { %3049 = vmatprep.mubr.msk.f32.mxu1 %vm3518_vm0, %v3519_v8 }
 0x12b   :  { %v280_v18 = vpop.f32.mrb[0].mxu1 }
 0x12c   :  { %v2932_v19 = vpop.f32.mrb[1].mxu1 }
 0x12d   :  { %v1296_v19 = vand.u32 4294901760, %v3881_v16 }
 0x133   :  { %v371_v20 = vpop.f32.mrb[2].mxu1 }
 0x134   :  { %v372_v21 = vadd.f32 %v371_v20, %v280_v18  ;;  %v2943_v22 = vpop.f32.mrb[3].mxu1  ;;  %v3887_v18 = vsub.f32 %v1210_v10, %v1224_v14  ;;  %v1303_v20 = vand.u32 4294901760, %v3883_v17 }
 0x135   :  { %v767_v23 = vpop.f32.mrb[0].mxu0  ;;  %v1310_v22 = vand.u32 4294901760, %v3885_v13 }
 0x136   :  { %v2994_v24 = vpop.f32.mrb[1].mxu0 }
 0x137   :  { %v1297_v24 = vsub.f32 %v3881_v16, %v1296_v19 }
 0x139   :  { %v924_v25 = vpop.f32.mrb[2].mxu0 }
 0x13a   :  { %v3008_v26 = vpop.f32.mrb[3].mxu0 }
 0x13b   :  { %v451_v27 = vpop.f32.mrb[4].mxu1  ;;  %v1311_v26 = vsub.f32 %v3885_v13, %v1310_v22 }
 0x13c   :  { %v452_v28 = vadd.f32 %v451_v27, %v372_v21  ;;  %v2954_v29 = vpop.f32.mrb[5].mxu1  ;;  %v3892_v21 = vpack.c.bf16 %v1224_v14, %v1221_v11 }
 0x13d   :  { %v1076_v30 = vpop.f32.mrb[4].mxu0 }
 0x13e   :  { %v3022_v31 = vpop.f32.mrb[5].mxu0  ;;  %3287 = vmatpush3.bf16.msra.mxu0 %v3892_v21 }
 0x13f   :  { %v1200_v31 = vld [vmem:[#allocation2 + $0x8] sm:$0xff]  ;;  %3294 = vmatprep.subr.bf16.mxu0 %v3517_v3 }
 0x143   :  { %v528_v32 = vpop.f32.mrb[6].mxu1 }
 0x144   :  { %v529_v33 = vadd.f32 %v528_v32, %v452_v28  ;;  %v2965_v34 = vpop.f32.mrb[7].mxu1  ;;  %v1298_v28 = vand.u32 4294901760, %v1297_v24  ;;  %v3909_v32 = vld [vmem:[%s4126_s5] sm:$0xff] }
 0x14b   :  { %v611_v35 = vpop.f32.mrb[8].mxu1 }
 0x14c   :  { %v612_v36 = vadd.f32 %v611_v35, %v529_v33  ;;  %v2976_v37 = vpop.f32.mrb[9].mxu1  ;;  %v1212_v35 = vsel %vm98_vm1, %v1200_v31, 0 }
 0x153   :  { %v686_v38 = vpop.f32.mrb[10].mxu1 }
 0x154   :  { %v687_v39 = vadd.f32 %v686_v38, %v612_v36  ;;  %v2987_v40 = vpop.f32.mrb[11].mxu1  ;;  %v3916_v36 = vld [vmem:[%s4126_s5 + $0x8] sm:$0xff]  ;;  %v1283_v38 = vand.u32 4294901760, %v1212_v35 }
 0x156   :  { %v768_v41 = vadd.f32 %v767_v23, %v687_v39  ;;  %v1317_v23 = vand.u32 4294901760, %v3887_v18  ;;  %v1702_v39 = vand.u32 4294901760, %v3909_v32 }
 0x157   :  { %v848_v42 = vpop.f32.mrb[12].mxu1 }
 0x158   :  { %v849_v43 = vadd.f32 %v848_v42, %v768_v41  ;;  %v3001_v44 = vpop.f32.mrb[13].mxu1  ;;  %v1318_v27 = vsub.f32 %v3887_v18, %v1317_v23  ;;  %v1284_v41 = vsub.f32 %v1212_v35, %v1283_v38  ;;  %v1705_v42 = vand.u32 4294901760, %v3916_v36 }
 0x159   :  { %v3930_v44 = vld [vmem:[%s4126_s5 + $0x18] sm:$0xff]  ;;  %v3310_v6 = vpack.c.bf16 %v1317_v23, %v1310_v22 }
 0x15a   :  { %v925_v45 = vadd.f32 %v924_v25, %v849_v43  ;;  %v1304_v25 = vsub.f32 %v3883_v17, %v1303_v20  ;;  %v1319_v34 = vand.u32 4294901760, %v1318_v27  ;;  %v3925_v43 = vld [vmem:[%s4126_s5 + $0x10] sm:$0xff]  ;;  %v3319_v12 = vpack.c.bf16 %v1705_v42, %v1702_v39  ;;  %s3521_s5 = smov 64  }
 0x15b   :  { %v999_v46 = vpop.f32.mrb[14].mxu1 }
 0x15c   :  { %v1000_v47 = vadd.f32 %v999_v46, %v925_v45  ;;  %v3015_v48 = vpop.f32.mrb[15].mxu1  ;;  %v1305_v29 = vand.u32 4294901760, %v1304_v25  ;;  %v1285_v45 = vand.u32 4294901760, %v1284_v41  ;;  %v3935_v46 = vsub.f32 %v3909_v32, %v1702_v39 }
 0x15d   :  { %v3940_v48 = vsub.f32 %v3916_v36, %v1705_v42 }
 0x15e   :  { %v1077_v49 = vadd.f32 %v1076_v30, %v1000_v47  ;;  %v1312_v30 = vand.u32 4294901760, %v1311_v26  ;;  %v3289_v37 = vpack.c.bf16 %v1305_v29, %v1298_v28  ;;  %v1286_v47 = vsub.f32 %v1284_v41, %v1285_v45 }
 0x15f   :  { %v1149_v50 = vpop.f32.mrb[16].mxu1 }
 0x160   :  { %v1150_v52 = vadd.f32 %v1149_v50, %v1077_v49  ;;  %v3029_v53 = vpop.f32.mrb[17].mxu1  ;;  %3290 = vmatpush3.bf16.msra.mxu1 %v3289_v37  ;;  %v3292_v40 = vpack.c.bf16 %v1319_v34, %v1312_v30  ;;  %v1708_v49 = vand.u32 4294901760, %v3925_v43  ;;  %v1711_v50 = vand.u32 4294901760, %v3930_v44 }
 0x161   :  { %3291 = vmatprep.subr.bf16.mxu1 %v3517_v3  ;;  %v1783_v53 = vand.u32 4294901760, %v3935_v46 }
 0x162   :  { %v1160_v54 = vadd.f32 %v2779_v51, %v1150_v52  ;;  %v3295_v51 = vpack.c.bf16 %v3883_v17, %v3881_v16  ;;  %v1287_v52 = vand.u32 4294901760, %v1286_v47  ;;  %v3322_v14 = vpack.c.bf16 %v1711_v50, %v1708_v49  ;;  %v102_v17 = vld [vmem:[%s4132_s11 + $0x8] sm:$0xff] }
 0x163   :  { %104 = vst.msk [vmem:[#allocation3 + $0x8] sm:$0xff] %vm98_vm1, %v102_v17 }
 0x164   :  { %3413 = vtanh.f32 %v1160_v54  ;;  %v2780_v57 = vmul.f32 -1.442695, %v1160_v54  ;;  %3293 = vmatpush3.bf16.msra.mxu1 %v3292_v40  ;;  %3039 = vmatmul.mubr.f32.vlgmr.msra.gmra.mrb[6].mxu0 %v1287_v52  ;;  %v1790_v54 = vand.u32 4294901760, %v3940_v48  ;;  %v3331_v40 = vpack.c.bf16 %v3940_v48, %v3935_v46 }
 0x165   :  { %3300 = vmatprep.subr.bf16.mxu1 %v3517_v3  ;;  %3296 = vmatpush3.bf16.msra.mxu0 %v3295_v51 }
 0x166   :  { %3415 = vpow2.f32 %v2780_v57  ;;  %v3298_v57 = vpack.c.bf16 %v3887_v18, %v3885_v13  ;;  %3297 = vmatprep.subr.bf16.mxu0 %v3517_v3  ;;  %3060 = vmatprep.mubr.msk.f32.mxu0 %vm3518_vm0, %v3519_v8 }
 0x167   :  { %3050 = vmatmul.mubr.f32.vlgmr.msra.gmra.mrb[18].mxu1 %v1283_v38 }
 0x168   :  { %3302 = vmatpush3.bf16.msra.mxu1 %v3879_v15  ;;  %3071 = vmatprep.mubr.msk.f32.mxu1 %vm3518_vm0, %v3519_v8 }
 0x169   :  { %3303 = vmatprep.subr.bf16.mxu1 %v3517_v3  ;;  %3299 = vmatpush3.bf16.msra.mxu0 %v3298_v57 }
 0x16a   :  { %3306 = vmatprep.subr.bf16.mxu0 %v3517_v3  ;;  %v1202_v13 = vld [vmem:[#allocation3 + $0x8] sm:$0xff] }
 0x16c   :  { %3305 = vmatpush3.bf16.msra.mxu1 %v3892_v21  ;;  %3061 = vmatmul.mubr.f32.vlgmr.msra.gmra.mrb[8].mxu0 %v1284_v41 }
 0x16d   :  { %3312 = vmatprep.subr.bf16.mxu1 %v3517_v3  ;;  %3082 = vmatprep.mubr.msk.f32.mxu0 %vm3518_vm0, %v3519_v8 }
 0x16e   :  { %v3414_v55 = vpop.eup %3413 }
 0x16f   :  { %1174 = vrot.lane.b32.xlu0 %v3414_v55, %s3520_s26  ;;  %v3951_v55 = vsub.f32 %v3925_v43, %v1708_v49  ;;  %3072 = vmatmul.mubr.f32.vlgmr.msra.gmra.mrb[20].mxu1 %v1285_v45 }
 0x170   :  { %v3416_v58 = vpop.eup %3415  ;;  %3314 = vmatpush3.bf16.msra.mxu1 %v3879_v15  ;;  %3093 = vmatprep.mubr.msk.f32.mxu1 %vm3518_vm0, %v3519_v8 }
 0x171   :  { %v1164_v59 = vadd.f32 1.0, %v3416_v58  ;;  %v1784_v58 = vsub.f32 %v3935_v46, %v1783_v53  ;;  %3315 = vmatprep.subr.bf16.mxu1 %v3517_v3 }
 0x173   :  { %1169 = vrot.lane.b32.xlu0 %v194_v56, %s3520_s26  ;;  %3417 = vrcp.f32 %v1164_v59  ;;  %v3954_v56 = vsub.f32 %v3930_v44, %v1711_v50  ;;  %v1791_v59 = vsub.f32 %v3940_v48, %v1790_v54  ;;  %v3343_v44 = vpack.c.bf16 %v1790_v54, %v1783_v53 }
 0x174   :  { %3317 = vmatpush3.bf16.msra.mxu1 %v3892_v21 }
 0x175   :  { %3324 = vmatprep.subr.bf16.mxu1 %v3517_v3  ;;  %v3334_v43 = vpack.c.bf16 %v3954_v56, %v3951_v55 }
 0x177   :  { %3094 = vmatmul.mubr.f32.vlgmr.msra.gmra.mrb[22].mxu1 %v1283_v38 }
 0x178   :  { %3115 = vmatprep.mubr.msk.f32.mxu1 %vm3518_vm0, %v3519_v8 }
 0x17d   :  { %v3855_v60 = vpop.eup %3417 }
 0x1e1   :  { %v1175_v61 = vpop.permute.xlu0 %1174 }
 0x1e2   :  { %v1177_v62 = vmul.f32 %v3855_v60, %v1175_v61  ;;  %v1797_v61 = vand.u32 4294901760, %v3951_v55 }
 0x1e4   :  { %1179 = vrot.lane.b32.xlu1 %v1177_v62, %s3520_s26  ;;  %v1804_v62 = vand.u32 4294901760, %v3954_v56  ;;  %v1798_v4 = vsub.f32 %v3951_v55, %v1797_v61 }
 0x1e5   :  { %v1170_v63 = vpop.permute.xlu0 %1169 }
 0x1e6   :  { %v1172_v0 = vmul.f32 %v3855_v60, %v1170_v63  ;;  %v3307_v63 = vpack.c.bf16 %v1303_v20, %v1296_v19  ;;  %v1805_v5 = vsub.f32 %v3954_v56, %v1804_v62  ;;  %v1799_v9 = vand.u32 4294901760, %v1798_v4 }
 0x1e7   :  { %v3346_v45 = vpack.c.bf16 %v1804_v62, %v1797_v61 }
 0x1e8   :  { %3308 = vmatpush3.bf16.msra.mxu0 %v3307_v63  ;;  %v1806_v10 = vand.u32 4294901760, %v1805_v5 }
 0x1e9   :  { %3309 = vmatprep.subr.bf16.mxu0 %v3517_v3 }
 0x1ea   :  { %v3328_v11 = vpack.c.bf16 %v1806_v10, %v1799_v9 }
 0x1ec   :  { %3311 = vmatpush3.bf16.msra.mxu0 %v3310_v6 }
 0x1ed   :  { %3318 = vmatprep.subr.bf16.mxu0 %v3517_v3 }
 0x1ef   :  { %3083 = vmatmul.mubr.f32.vlgmr.msra.gmra.mrb[10].mxu0 %v1283_v38 }
 0x1f0   :  { %3104 = vmatprep.mubr.msk.f32.mxu0 %vm3518_vm0, %v3519_v8  ;;  %3320 = vmatpush3.bf16.msra.mxu0 %v3319_v12 }
 0x1f1   :  { %3321 = vmatprep.subr.bf16.mxu0 %v3517_v3 }
 0x1f4   :  { %3323 = vmatpush3.bf16.msra.mxu0 %v3322_v14 }
 0x1f5   :  { %3330 = vmatprep.subr.bf16.mxu0 %v3517_v3 }
 0x237   :  { %v1289_v19 = vpop.f32.mrb[6].mxu0 }
 0x238   :  { %v3040_v21 = vpop.f32.mrb[7].mxu0 }
 0x23a   :  { %v1380_v18 = vpop.f32.mrb[18].mxu1 }
 0x23b   :  { %v3051_v20 = vpop.f32.mrb[19].mxu1  ;;  %v1381_v22 = vadd.f32 %v1380_v18, %v1289_v19  ;;  %v2232_v18 = vld [vmem:[%s4129_s8] sm:$0xff]  ;;  %v2233_v19 = vld [vmem:[%s4129_s8 + $0x8] sm:$0xff] }
 0x23c   :  { %v2246_v20 = vand.u32 4294901760, %v2232_v18  ;;  %v2249_v21 = vand.u32 4294901760, %v2233_v19 }
 0x23f   :  { %v1460_v24 = vpop.f32.mrb[8].mxu0 }
 0x240   :  { %v1461_v25 = vadd.f32 %v1460_v24, %v1381_v22  ;;  %v3062_v26 = vpop.f32.mrb[9].mxu0  ;;  %v4060_v22 = vpack.c.bf16 %v2249_v21, %v2246_v20  ;;  %v2333_v24 = vsub.f32 %v2233_v19, %v2249_v21 }
 0x242   :  { %v1537_v23 = vpop.f32.mrb[20].mxu1 }
 0x243   :  { %v1538_v29 = vadd.f32 %v1537_v23, %v1461_v25  ;;  %v2326_v23 = vsub.f32 %v2232_v18, %v2246_v20 }
 0x256   :  { %v1180_v1 = vpop.permute.xlu1 %1179 }
 0x257   :  { %v3860_v2 = vadd.f32 %v1180_v1, %v1172_v0  ;;  %v1785_v0 = vand.u32 4294901760, %v1784_v58  ;;  %v1792_v1 = vand.u32 4294901760, %v1791_v59 }
 0x259   :  { %3419 = vtanh.f32 %v3860_v2  ;;  %v3325_v7 = vpack.c.bf16 %v1792_v1, %v1785_v0  ;;  %v2781_v0 = vld [vmem:[#allocation10] ss:$0 sm:$0xff] }
 0x25b   :  { %3326 = vmatpush3.bf16.msra.mxu1 %v3325_v7 }
 0x25c   :  { %3327 = vmatprep.subr.bf16.mxu1 %v3517_v3 }
 0x25f   :  { %3329 = vmatpush3.bf16.msra.mxu1 %v3328_v11 }
 0x260   :  { %3336 = vmatprep.subr.bf16.mxu1 %v3517_v3 }
 0x263   :  { %v3420_v33 = vpop.eup %3419 }
 0x264   :  { %1185 = vrot.lane.b32.xlu1 %v3420_v33, %s3520_s26 }
 0x2c2   :  { %v1620_v34 = vpop.f32.mrb[10].mxu0 }
 0x2c3   :  { %v1621_v36 = vadd.f32 %v1620_v34, %v1538_v29  ;;  %v3084_v37 = vpop.f32.mrb[11].mxu0 }
 0x2d6   :  { %v1186_v15 = vpop.permute.xlu1 %1185 }
 0x2d7   :  { %v1188_v16 = vmul.f32 %v3855_v60, %v1186_v15  ;;  %v3073_v60 = vpop.f32.mrb[21].mxu1 }
 0x2d8   :  { %v1695_v32 = vpop.f32.mrb[22].mxu1  ;;  %v2234_v60 = vld [vmem:[%s4129_s8 + $0x10] sm:$0xff] }
 0x2d9   :  { %1190 = vrot.lane.b32.xlu0 %v1188_v16, %s3521_s5  ;;  %v3095_v35 = vpop.f32.mrb[23].mxu1  ;;  %v1696_v41 = vadd.f32 %v1695_v32, %v1621_v36  ;;  %v2252_v25 = vand.u32 4294901760, %v2234_v60 }
 0x2dd   :  { %2202 = vrot.lane.b32.xlu0 %v1202_v13, %s3520_s26 }
 0x34b   :  { %v1191_v27 = vpop.permute.xlu0 %1190 }
 0x34c   :  { %1193 = vst.msk [vmem:[#allocation2] sm:$0xff] %vm98_vm1, %v1191_v27  ;;  %v1699_v28 = vsel %vm98_vm1, %v1191_v27, 0  ;;  %v2327_v27 = vand.u32 4294901760, %v2326_v23 }
 0x34d   :  { %v1770_v30 = vand.u32 4294901760, %v1699_v28 }
 0x34e   :  { %v2328_v32 = vsub.f32 %v2326_v23, %v2327_v27 }
 0x34f   :  { %v1771_v31 = vsub.f32 %v1699_v28, %v1770_v30  ;;  %3116 = vmatmul.mubr.f32.vlgmr.msra.gmra.mrb[24].mxu1 %v1770_v30  ;;  %v2334_v28 = vand.u32 4294901760, %v2333_v24 }
 0x350   :  { %3338 = vmatpush3.bf16.msra.mxu1 %v3319_v12  ;;  %3137 = vmatprep.mubr.msk.f32.mxu1 %vm3518_vm0, %v3519_v8  ;;  %v2329_v34 = vand.u32 4294901760, %v2328_v32 }
 0x351   :  { %v1772_v33 = vand.u32 4294901760, %v1771_v31  ;;  %3339 = vmatprep.subr.bf16.mxu1 %v3517_v3 }
 0x353   :  { %v1773_v38 = vsub.f32 %v1771_v31, %v1772_v33  ;;  %v2734_v39 = vld [vmem:[#allocation2] sm:$0xff] }
 0x354   :  { %2736 = vst.msk [vmem:[%s4134_s13] sm:$0xff] %vm98_vm1, %v2734_v39  ;;  %3341 = vmatpush3.bf16.msra.mxu1 %v3322_v14 }
 0x355   :  { %3348 = vmatprep.subr.bf16.mxu1 %v3517_v3  ;;  %v1774_v42 = vand.u32 4294901760, %v1773_v38 }
 0x357   :  { %3138 = vmatmul.mubr.f32.vlgmr.msra.gmra.mrb[26].mxu1 %v1772_v33  ;;  %3105 = vmatmul.mubr.f32.vlgmr.msra.gmra.mrb[12].mxu0 %v1774_v42  ;;  %v2335_v33 = vsub.f32 %v2333_v24, %v2334_v28 }
 0x358   :  { %3332 = vmatpush3.bf16.msra.mxu0 %v3331_v40  ;;  %3350 = vmatpush3.bf16.msra.mxu1 %v3319_v12 }
 0x359   :  { %3333 = vmatprep.subr.bf16.mxu0 %v3517_v3  ;;  %3351 = vmatprep.subr.bf16.mxu1 %v3517_v3  ;;  %v2336_v37 = vand.u32 4294901760, %v2335_v33 }
 0x35a   :  { %3126 = vmatprep.mubr.msk.f32.mxu0 %vm3518_vm0, %v3519_v8  ;;  %3159 = vmatprep.mubr.msk.f32.mxu1 %vm3518_vm0, %v3519_v8 }
 0x35b   :  { %v3361_v42 = vpack.c.bf16 %v2336_v37, %v2329_v34 }
 0x35c   :  { %3335 = vmatpush3.bf16.msra.mxu0 %v3334_v43  ;;  %3353 = vmatpush3.bf16.msra.mxu1 %v3322_v14  ;;  %v2203_v14 = vpop.permute.xlu0 %2202 }
 0x35d   :  { %3342 = vmatprep.subr.bf16.mxu0 %v3517_v3 }
 0x35f   :  { %3127 = vmatmul.mubr.f32.vlgmr.msra.gmra.mrb[14].mxu0 %v1771_v31  ;;  %3160 = vmatmul.mubr.f32.vlgmr.msra.gmra.mrb[28].mxu1 %v1770_v30 }
 0x360   :  { %3344 = vmatpush3.bf16.msra.mxu0 %v3343_v44  ;;  %3148 = vmatprep.mubr.msk.f32.mxu0 %vm3518_vm0, %v3519_v8 }
 0x361   :  { %3345 = vmatprep.subr.bf16.mxu0 %v3517_v3 }
 0x364   :  { %3347 = vmatpush3.bf16.msra.mxu0 %v3346_v45 }
 0x365   :  { %3354 = vmatprep.subr.bf16.mxu0 %v3517_v3 }
 0x367   :  { %3149 = vmatmul.mubr.f32.vlgmr.msra.gmra.mrb[16].mxu0 %v1770_v30  ;;  %v2340_v30 = vsub.f32 %v2234_v60, %v2252_v25 }
 0x368   :  { %3170 = vmatprep.mubr.msk.f32.mxu0 %vm3518_vm0, %v3519_v8  ;;  %3356 = vmatpush3.bf16.msra.mxu0 %v4060_v22 }
 0x369   :  { %3357 = vmatprep.subr.bf16.mxu0 %v3517_v3  ;;  %v2341_v35 = vand.u32 4294901760, %v2340_v30 }
 0x36b   :  { %v2342_v39 = vsub.f32 %v2340_v30, %v2341_v35 }
 0x36d   :  { %v2343_v43 = vand.u32 4294901760, %v2342_v39 }
 0x422   :  { %v1867_v46 = vpop.f32.mrb[24].mxu1 }
 0x423   :  { %v3117_v47 = vpop.f32.mrb[25].mxu1 }
 0x424   :  { %v3367_v47 = vpack.c.bf16 %v2333_v24, %v2326_v23 }
 0x42a   :  { %v2024_v48 = vpop.f32.mrb[26].mxu1  ;;  %v1776_v49 = vpop.f32.mrb[12].mxu0 }
 0x42b   :  { %v1777_v50 = vadd.f32 %v1776_v49, %v1696_v41  ;;  %v3139_v51 = vpop.f32.mrb[27].mxu1  ;;  %v3106_v52 = vpop.f32.mrb[13].mxu0 }
 0x42d   :  { %v1868_v53 = vadd.f32 %v1867_v46, %v1777_v50  ;;  %v3379_v50 = vpack.c.bf16 %v2334_v28, %v2327_v27 }
 0x432   :  { %v1947_v54 = vpop.f32.mrb[14].mxu0  ;;  %v2182_v55 = vpop.f32.mrb[28].mxu1 }
 0x433   :  { %v1948_v56 = vadd.f32 %v1947_v54, %v1868_v53  ;;  %v3128_v57 = vpop.f32.mrb[15].mxu0  ;;  %v3161_v58 = vpop.f32.mrb[29].mxu1 }
 0x435   :  { %v2025_v59 = vadd.f32 %v2024_v48, %v1948_v56 }
 0x43a   :  { %v2107_v61 = vpop.f32.mrb[16].mxu0 }
 0x43b   :  { %v2108_v62 = vadd.f32 %v2107_v61, %v2025_v59  ;;  %v3150_v63 = vpop.f32.mrb[17].mxu0 }
 0x43c   :  { %v2783_v63 = vld [vmem:[%s4130_s9] ss:$0 sm:$0xff] }
 0x43d   :  { %v2183_v1 = vadd.f32 %v2182_v55, %v2108_v62 }
 0x43f   :  { %v2193_v4 = vadd.f32 %v2781_v0, %v2183_v1 }
 0x441   :  { %3421 = vtanh.f32 %v2193_v4  ;;  %v2782_v6 = vmul.f32 -1.442695, %v2193_v4 }
 0x443   :  { %3423 = vpow2.f32 %v2782_v6 }
 0x44b   :  { %v3422_v5 = vpop.eup %3421 }
 0x44c   :  { %2207 = vrot.lane.b32.xlu1 %v3422_v5, %s3520_s26 }
 0x44d   :  { %v3424_v7 = vpop.eup %3423 }
 0x44e   :  { %v2197_v9 = vadd.f32 1.0, %v3424_v7 }
 0x450   :  { %3425 = vrcp.f32 %v2197_v9 }
 0x45a   :  { %v3426_v10 = vpop.eup %3425 }
 0x45b   :  { %v2205_v15 = vmul.f32 %v3426_v10, %v2203_v14 }
 0x4be   :  { %v2208_v11 = vpop.permute.xlu1 %2207 }
 0x4bf   :  { %v2210_v12 = vmul.f32 %v3426_v10, %v2208_v11 }
 0x4c1   :  { %2212 = vrot.lane.b32.xlu1 %v2210_v12, %s3520_s26 }
 0x533   :  { %v2213_v16 = vpop.permute.xlu1 %2212 }
 0x534   :  { %v2215_v17 = vadd.f32 %v2213_v16, %v2205_v15 }
 0x536   :  { %3427 = vtanh.f32 %v2215_v17 }
 0x540   :  { %v3428_v13 = vpop.eup %3427 }
 0x541   :  { %2218 = vrot.lane.b32.xlu0 %v3428_v13, %s3520_s26 }
 0x545   :  { %1195 = vrot.lane.b32.xlu0 %v3860_v2, %s3522_s1  ;;  %v2235_v2 = vld [vmem:[%s4129_s8 + $0x18] sm:$0xff] }
 0x546   :  { %v2255_v26 = vand.u32 4294901760, %v2235_v2 }
 0x548   :  { %v4070_v29 = vpack.c.bf16 %v2255_v26, %v2252_v25  ;;  %v2347_v31 = vsub.f32 %v2235_v2, %v2255_v26 }
 0x54a   :  { %3359 = vmatpush3.bf16.msra.mxu0 %v4070_v29  ;;  %v2348_v36 = vand.u32 4294901760, %v2347_v31  ;;  %v3370_v48 = vpack.c.bf16 %v2347_v31, %v2340_v30 }
 0x54b   :  { %3360 = vmatprep.subr.bf16.mxu0 %v3517_v3 }
 0x54c   :  { %v2349_v40 = vsub.f32 %v2347_v31, %v2348_v36  ;;  %v3382_v51 = vpack.c.bf16 %v2348_v36, %v2341_v35 }
 0x54e   :  { %v2350_v44 = vand.u32 4294901760, %v2349_v40 }
 0x550   :  { %v3364_v46 = vpack.c.bf16 %v2350_v44, %v2343_v43 }
 0x5b3   :  { %v2219_v38 = vpop.permute.xlu0 %2218 }
 0x5b4   :  { %v2221_v41 = vmul.f32 %v3426_v10, %v2219_v38 }
 0x5b6   :  { %2223 = vrot.lane.b32.xlu1 %v2221_v41, %s3521_s5 }
 0x5b7   :  { %v1196_v45 = vpop.permute.xlu0 %1195 }
 0x5b8   :  { %1198 = vst.msk [vmem:[#allocation3] sm:$0xff] %vm98_vm1, %v1196_v45 }
 0x5ba   :  { %2228 = vrot.lane.b32.xlu1 %v2215_v17, %s3522_s1 }
 0x5bf   :  { %v2738_v49 = vld [vmem:[#allocation3] sm:$0xff] }
 0x5c0   :  { %2740 = vst.msk [vmem:[%s4135_s14] sm:$0xff] %vm98_vm1, %v2738_v49 }
 0x628   :  { %v2224_v52 = vpop.permute.xlu1 %2223 }
 0x629   :  { %2226 = vst.msk [vmem:[#allocation2 + $0x8] sm:$0xff] %vm98_vm1, %v2224_v52  ;;  %v2243_v53 = vsel %vm98_vm1, %v2224_v52, 0 }
 0x62a   :  { %v2314_v54 = vand.u32 4294901760, %v2243_v53 }
 0x62c   :  { %v2315_v55 = vsub.f32 %v2243_v53, %v2314_v54  ;;  %v2229_v56 = vpop.permute.xlu1 %2228 }
 0x62d   :  { %2231 = vst.msk [vmem:[#allocation3 + $0x8] sm:$0xff] %vm98_vm1, %v2229_v56 }
 0x62e   :  { %v2316_v57 = vand.u32 4294901760, %v2315_v55 }
 0x630   :  { %v2317_v58 = vsub.f32 %v2315_v55, %v2316_v57  ;;  %v2735_v59 = vld [vmem:[#allocation2 + $0x8] sm:$0xff] }
 0x631   :  { %2737 = vst.msk [vmem:[%s4134_s13 + $0x8] sm:$0xff] %vm98_vm1, %v2735_v59 }
 0x632   :  { %v2318_v61 = vand.u32 4294901760, %v2317_v58 }
 0x634   :  { %v2739_v62 = vld [vmem:[#allocation3 + $0x8] sm:$0xff]  ;;  %3171 = vmatmul.mubr.f32.vlgmr.msra.gmra.mrb[18].mxu0 %v2318_v61 }
 0x635   :  { %2741 = vst.msk [vmem:[%s4135_s14 + $0x8] sm:$0xff] %vm98_vm1, %v2739_v62  ;;  %3362 = vmatpush3.bf16.msra.mxu0 %v3361_v42  ;;  %3181 = vmatprep.mubr.msk.f32.mxu0 %vm3518_vm0, %v3519_v8 }
 0x636   :  { %3363 = vmatprep.subr.bf16.mxu0 %v3517_v3 }
 0x639   :  { %3365 = vmatpush3.bf16.msra.mxu0 %v3364_v46 }
 0x63a   :  { %3366 = vmatprep.subr.bf16.mxu0 %v3517_v3 }
 0x63c   :  { %3182 = vmatmul.mubr.f32.vlgmr.msra.gmra.mrb[18].mxu0 %v2314_v54 }
 0x63d   :  { %3368 = vmatpush3.bf16.msra.mxu0 %v3367_v47  ;;  %3192 = vmatprep.mubr.msk.f32.mxu0 %vm3518_vm0, %v3519_v8 }
 0x63e   :  { %3369 = vmatprep.subr.bf16.mxu0 %v3517_v3 }
 0x641   :  { %3371 = vmatpush3.bf16.msra.mxu0 %v3370_v48 }
 0x642   :  { %3372 = vmatprep.subr.bf16.mxu0 %v3517_v3 }
 0x644   :  { %3193 = vmatmul.mubr.f32.vlgmr.msra.gmra.mrb[18].mxu0 %v2315_v55 }
 0x645   :  { %3374 = vmatpush3.bf16.msra.mxu0 %v4060_v22  ;;  %3203 = vmatprep.mubr.msk.f32.mxu0 %vm3518_vm0, %v3519_v8 }
 0x646   :  { %3375 = vmatprep.subr.bf16.mxu0 %v3517_v3 }
 0x649   :  { %3377 = vmatpush3.bf16.msra.mxu0 %v4070_v29 }
 0x64a   :  { %3378 = vmatprep.subr.bf16.mxu0 %v3517_v3 }
 0x64c   :  { %3204 = vmatmul.mubr.f32.vlgmr.msra.gmra.mrb[18].mxu0 %v2316_v57 }
 0x64d   :  { %3380 = vmatpush3.bf16.msra.mxu0 %v3379_v50  ;;  %3214 = vmatprep.mubr.msk.f32.mxu0 %vm3518_vm0, %v3519_v8 }
 0x64e   :  { %3381 = vmatprep.subr.bf16.mxu0 %v3517_v3 }
 0x651   :  { %3383 = vmatpush3.bf16.msra.mxu0 %v3382_v51 }
 0x652   :  { %3384 = vmatprep.subr.bf16.mxu0 %v3517_v3 }
 0x654   :  { %3215 = vmatmul.mubr.f32.vlgmr.msra.gmra.mrb[18].mxu0 %v2314_v54 }
 0x655   :  { %3386 = vmatpush3.bf16.msra.mxu0 %v4060_v22  ;;  %3225 = vmatprep.mubr.msk.f32.mxu0 %vm3518_vm0, %v3519_v8 }
 0x656   :  { %3387 = vmatprep.subr.bf16.mxu0 %v3517_v3 }
 0x659   :  { %3389 = vmatpush3.bf16.msra.mxu0 %v4070_v29 }
 0x65c   :  { %3226 = vmatmul.mubr.f32.vlgmr.msra.gmra.mrb[18].mxu0 %v2314_v54 }
 0x72f   :  { %v2726_v0 = vpop.f32.mrb[18].mxu0 }
 0x730   :  { %v3390_v1 = vadd.f32 %v2783_v63, %v2726_v0  ;;  %v3227_v4 = vpop.f32.mrb[19].mxu0 }
 0x732   :  { %2730 = vst [vmem:[%s4133_s12] sm:$0xff] %v3390_v1 }
 0x733   :  { %2754 = vsyncpa [#allocation5], 1 }
 0x734   :  { %2755 = vsyncpa [#allocation9], 1 }
 0x735   :  { %2756 = vsyncpa [#allocation6], 1 }

</bundles_post_ra>
